<compile_context>
chip_gen: v5e
topology: v5e:2x2
jax: 0.10.0
libtpu: 0.0.40
codegen_flags: <defaults>
</compile_context>

<pallas_src>
import math
import jax
import jax.numpy as jnp
from jax.experimental import pallas as pl
from jax.experimental.pallas import tpu as pltpu

# ----------------------------- configuration ------------------------------
B = 2
INPUT_SIZE = 16
HIDDEN = 32
NUM_UNITS = 4
K_TOP = 2

NUM_INPUT_HEADS = 1
INPUT_KEY = 16        # input_key_size (== input_query_size, as the torch code assumes)
INPUT_QUERY = 16
INPUT_VALUE = 32      # input_value_size

NUM_COMM_HEADS = 2
COMM_KEY = 16
COMM_QUERY = 16
COMM_VALUE = HIDDEN   # forced to hidden_size by RIMCell.__init__

F32 = jnp.float32

# The packed kernel shares its two constant plumbing matrices; this config
# satisfies the equalities it relies on.
assert NUM_INPUT_HEADS == 1
assert INPUT_KEY == INPUT_QUERY == COMM_KEY == COMM_QUERY == 16
assert INPUT_VALUE == HIDDEN == COMM_VALUE == 32


# ------------------------------ fused kernel -------------------------------
def _rim_fused_kernel(x_ref, h_ref, wk_ref, bk_ref, wv_ref, bv_ref, wq_in_ref,
                      wx2h_ref, wh2h_ref, wqc_ref, wkc_ref, wvc_ref, woc_ref,
                      out_ref):
    U, H, UH = NUM_UNITS, HIDDEN, NUM_UNITS * HIDDEN

    x = x_ref[...]                       # (B, INPUT_SIZE)
    h_flat = h_ref[...]                  # (B, U*H) lane-dense hidden state

    # Constant 0/1 plumbing matrices built from 2-D iotas (no divisions, no
    # reshapes).  seg16 segment-sums each unit's 16-lane key block;
    # e32 expands a per-unit scalar to its 32-lane value/hidden block.
    r_s = jax.lax.broadcasted_iota(jnp.int32, (U * INPUT_KEY, U), 0)
    c_s = jax.lax.broadcasted_iota(jnp.int32, (U * INPUT_KEY, U), 1)
    seg16 = ((r_s >= c_s * INPUT_KEY) & (r_s < (c_s + 1) * INPUT_KEY)).astype(F32)
    r_e = jax.lax.broadcasted_iota(jnp.int32, (U, UH), 0)
    c_e = jax.lax.broadcasted_iota(jnp.int32, (U, UH), 1)
    e32 = ((c_e >= r_e * H) & (c_e < (r_e + 1) * H)).astype(F32)

    def tile_lanes(a, n):                # (rows, d) -> (rows, n*d) along lanes
        return jnp.concatenate([a] * n, axis=-1)

    # ---------------- input attention ----------------
    key_real = jnp.dot(x, wk_ref[...], preferred_element_type=F32) + bk_ref[...]
    val_real = jnp.dot(x, wv_ref[...], preferred_element_type=F32) + bv_ref[...]
    key_null = bk_ref[...]               # null input row is all zeros -> bias only
    val_null = bv_ref[...]

    q_in = jnp.dot(h_flat, wq_in_ref[...], preferred_element_type=F32)   # (B, U*16)
    isk = 1.0 / math.sqrt(INPUT_KEY)
    s_real = jnp.dot(q_in * tile_lanes(key_real, U), seg16,
                     preferred_element_type=F32) * isk                   # (B, U)
    s_null = jnp.dot(q_in * tile_lanes(key_null, U), seg16,
                     preferred_element_type=F32) * isk                   # (B, U)
    # num_input_heads == 1, so the mean over heads is the identity.

    # top-k unit selection done in-kernel by rank counting (ties -> lower index,
    # matching lax.top_k / torch.topk)
    lane_u = jax.lax.broadcasted_iota(jnp.int32, (1, U), 1)
    rank = jnp.zeros((B, U), F32)
    for v in range(U):
        s_v = s_real[:, v:v + 1]
        beats = (s_v > s_real) | ((s_v == s_real) & (lane_u > v))
        rank = rank + beats.astype(F32)
    mask = (rank < float(K_TOP)).astype(F32)                             # (B, U)

    # softmax over {real, null} and masked input mixture
    m = jnp.maximum(s_real, s_null)
    e_r = jnp.exp(s_real - m)
    e_n = jnp.exp(s_null - m)
    inv_den = pl.reciprocal(e_r + e_n, approx=True)
    p_r = e_r * inv_den * mask
    p_n = e_n * inv_den * mask
    # TODO(synk): input_dropout / comm_dropout are identity here (eval-mode semantics).
    inputs_flat = (jnp.dot(p_r, e32, preferred_element_type=F32) * tile_lanes(val_real, U)
                   + jnp.dot(p_n, e32, preferred_element_type=F32) * tile_lanes(val_null, U))

    # ---------------- group GRU (block-diagonal packed weights) ----------------
    gx = jnp.dot(inputs_flat, wx2h_ref[...], preferred_element_type=F32)  # (B, 3*UH)
    gh = jnp.dot(h_flat, wh2h_ref[...], preferred_element_type=F32)       # (B, 3*UH)
    resetgate = jax.nn.sigmoid(gx[:, :UH] + gh[:, :UH])
    inputgate = jax.nn.sigmoid(gx[:, UH:2 * UH] + gh[:, UH:2 * UH])
    newgate = jnp.tanh(gx[:, 2 * UH:] + resetgate * gh[:, 2 * UH:])
    hy = newgate + inputgate * (h_flat - newgate)                         # (B, UH)

    # ---------------- communication attention ----------------
    # (blocked_grad is the identity in the forward pass)
    ick = 1.0 / math.sqrt(COMM_KEY)
    comm_out = jnp.zeros((B, UH), F32)
    for hd in range(NUM_COMM_HEADS):
        q_h = jnp.dot(hy, wqc_ref[hd], preferred_element_type=F32)        # (B, U*CQ)
        k_h = jnp.dot(hy, wkc_ref[hd], preferred_element_type=F32)        # (B, U*CK)
        v_h = jnp.dot(hy, wvc_ref[hd], preferred_element_type=F32)        # (B, U*CV)
        # attention scores, unrolled over the key unit v: s_cols[v][b, u]
        s_cols = []
        for v in range(U):
            k_v = k_h[:, v * COMM_KEY:(v + 1) * COMM_KEY]
            s_cols.append(jnp.dot(q_h * tile_lanes(k_v, U), seg16,
                                  preferred_element_type=F32) * ick)
        m_s = s_cols[0]
        for v in range(1, U):
            m_s = jnp.maximum(m_s, s_cols[v])
        e_cols = [jnp.exp(s - m_s) for s in s_cols]
        den = e_cols[0]
        for v in range(1, U):
            den = den + e_cols[v]
        inv = pl.reciprocal(den, approx=True)
        ctx = jnp.zeros((B, U * COMM_VALUE), F32)
        for v in range(U):
            p_v = e_cols[v] * inv * mask                                  # query-row mask
            v_v = v_h[:, v * COMM_VALUE:(v + 1) * COMM_VALUE]
            ctx = ctx + jnp.dot(p_v, e32, preferred_element_type=F32) * tile_lanes(v_v, U)
        comm_out = comm_out + jnp.dot(ctx, woc_ref[hd], preferred_element_type=F32)

    h_comm = comm_out + hy
    mask_rep = jnp.dot(mask, e32, preferred_element_type=F32)             # (B, UH)
    out_ref[...] = mask_rep * h_comm + (1.0 - mask_rep) * h_flat


# ------------------------- host-side weight packing -------------------------
def _block_diag(w):
    """(U, din, dout) -> (U*din, U*dout) with w[u] on the diagonal blocks."""
    nu, din, dout = w.shape
    out = jnp.zeros((nu * din, nu * dout), w.dtype)
    for u in range(nu):
        out = out.at[u * din:(u + 1) * din, u * dout:(u + 1) * dout].set(w[u])
    return out


def pack_params(p):
    """One-time packing of GroupLinearLayer weights into block-diag matrices."""
    # gate-major packing of the GRU weights: columns = [reset | input | new],
    # each U*H wide, so the kernel can split gates with 128-aligned slices.
    wx2h_bd = jnp.concatenate(
        [_block_diag(p['wx2h'][:, :, g * HIDDEN:(g + 1) * HIDDEN]) for g in range(3)], axis=1)
    wh2h_bd = jnp.concatenate(
        [_block_diag(p['wh2h'][:, :, g * HIDDEN:(g + 1) * HIDDEN]) for g in range(3)], axis=1)
    # per-head block-diagonal packing of the communication-attention weights
    wqc = jnp.stack([_block_diag(p['wq_'][:, :, h * COMM_QUERY:(h + 1) * COMM_QUERY])
                     for h in range(NUM_COMM_HEADS)])
    wkc = jnp.stack([_block_diag(p['wk_'][:, :, h * COMM_KEY:(h + 1) * COMM_KEY])
                     for h in range(NUM_COMM_HEADS)])
    wvc = jnp.stack([_block_diag(p['wv_'][:, :, h * COMM_VALUE:(h + 1) * COMM_VALUE])
                     for h in range(NUM_COMM_HEADS)])
    woc = jnp.stack([_block_diag(p['wo'][:, h * COMM_VALUE:(h + 1) * COMM_VALUE, :])
                     for h in range(NUM_COMM_HEADS)])
    return dict(wk_t=p['wk_t'], bk=p['bk'], wv_t=p['wv_t'], bv=p['bv'],
                wq_bd=_block_diag(p['wq']),
                wx2h_bd=wx2h_bd, wh2h_bd=wh2h_bd,
                wqc=wqc, wkc=wkc, wvc=wvc, woc=woc)


# --------------------------------- wrapper ----------------------------------
_VMEM_SPEC = pl.BlockSpec(memory_space=pltpu.MemorySpace.VMEM)


@jax.jit
def rim_cell_forward(x, hs, pp):
    x2d = x[:, 0, :]                                   # (B, INPUT_SIZE)
    hs_flat = hs.reshape(B, NUM_UNITS * HIDDEN)        # (B, 128) lane-dense
    # NOTE: for a recurrent unroll, input_output_aliases={1: 0} would let the
    # new hidden state reuse hs_flat's buffer; omitted here since the test
    # still reads the old hs afterwards.
    out_flat = pl.pallas_call(
        _rim_fused_kernel,
        out_shape=jax.ShapeDtypeStruct((B, NUM_UNITS * HIDDEN), F32),
        in_specs=[_VMEM_SPEC] * 13,
        out_specs=_VMEM_SPEC,
    )(x2d, hs_flat, pp['wk_t'], pp['bk'], pp['wv_t'], pp['bv'], pp['wq_bd'],
      pp['wx2h_bd'], pp['wh2h_bd'], pp['wqc'], pp['wkc'], pp['wvc'], pp['woc'])
    return out_flat.reshape(B, NUM_UNITS, HIDDEN), None   # GRU: cs is None


# --------------------------- pure-JAX reference -----------------------------
def topk_mask(scores):
    # not_null_scores = attention_scores[:, :, 0]; top-k units per batch row
    not_null = scores[:, :, 0]                                      # (B, U)
    _, idx = jax.lax.top_k(not_null, K_TOP)                         # (B, K)
    rows = jnp.repeat(jnp.arange(B), K_TOP)
    mask = jnp.zeros((B, NUM_UNITS), F32).at[rows, idx.reshape(-1)].set(1.0)
    return mask


def rim_reference(x, hs, p):
    null_input = jnp.zeros((x.shape[0], 1, x.shape[2]), F32)
    xc = jnp.concatenate([x, null_input], axis=1)
    key = xc @ p['wk_t'] + p['bk']
    val = xc @ p['wv_t'] + p['bv']
    qry = jnp.einsum('buh,uho->buo', hs, p['wq'])
    keyh = key.reshape(B, 2, NUM_INPUT_HEADS, INPUT_KEY).transpose(0, 2, 1, 3)
    valh = val.reshape(B, 2, NUM_INPUT_HEADS, INPUT_VALUE).transpose(0, 2, 1, 3).mean(1)
    qryh = qry.reshape(B, NUM_UNITS, NUM_INPUT_HEADS, INPUT_QUERY).transpose(0, 2, 1, 3)
    scores = (jnp.einsum('bhuq,bhtq->bhut', qryh, keyh) / math.sqrt(INPUT_KEY)).mean(1)
    mask = topk_mask(scores)
    probs = jax.nn.softmax(scores, axis=-1)
    inputs = jnp.einsum('but,btv->buv', probs, valh) * mask[:, :, None]
    gate_x = jnp.einsum('buv,uvo->buo', inputs, p['wx2h'])
    gate_h = jnp.einsum('buh,uho->buo', hs, p['wh2h'])
    i_r, i_i, i_n = jnp.split(gate_x, 3, axis=-1)
    h_r, h_i, h_n = jnp.split(gate_h, 3, axis=-1)
    rg = jax.nn.sigmoid(i_r + h_r)
    ig = jax.nn.sigmoid(i_i + h_i)
    ng = jnp.tanh(i_n + rg * h_n)
    hy = ng + ig * (hs - ng)
    q = jnp.einsum('buh,uho->buo', hy, p['wq_']).reshape(
        B, NUM_UNITS, NUM_COMM_HEADS, COMM_QUERY).transpose(0, 2, 1, 3)
    k = jnp.einsum('buh,uho->buo', hy, p['wk_']).reshape(
        B, NUM_UNITS, NUM_COMM_HEADS, COMM_KEY).transpose(0, 2, 1, 3)
    v = jnp.einsum('buh,uho->buo', hy, p['wv_']).reshape(
        B, NUM_UNITS, NUM_COMM_HEADS, COMM_VALUE).transpose(0, 2, 1, 3)
    s = jnp.einsum('bhud,bhtd->bhut', q, k) / math.sqrt(COMM_KEY)
    pr = jax.nn.softmax(s, axis=-1) * mask[:, None, :, None]
    ctx = jnp.einsum('bhut,bhtd->bhud', pr, v).transpose(0, 2, 1, 3).reshape(
        B, NUM_UNITS, NUM_COMM_HEADS * COMM_VALUE)
    comm = jnp.einsum('buc,uco->buo', ctx, p['wo']) + hy
    return mask[:, :, None] * comm + (1.0 - mask[:, :, None]) * hs


# --------------------------------- main -------------------------------------
def _init_params(key):
    ks = jax.random.split(key, 10)
    n = lambda k, shape, s: s * jax.random.normal(k, shape, F32)
    return dict(
        wk_t=n(ks[0], (INPUT_SIZE, NUM_INPUT_HEADS * INPUT_QUERY), 0.05),
        bk=n(ks[1], (1, NUM_INPUT_HEADS * INPUT_QUERY), 0.05),
        wv_t=n(ks[2], (INPUT_SIZE, NUM_INPUT_HEADS * INPUT_VALUE), 0.05),
        bv=n(ks[3], (1, NUM_INPUT_HEADS * INPUT_VALUE), 0.05),
        wq=n(ks[4], (NUM_UNITS, HIDDEN, NUM_INPUT_HEADS * INPUT_QUERY), 0.01),
        # NOTE: torch's GroupGRUCell.reset_parameters sets these to all-ones;
        # we use small deterministic random values to keep the gates unsaturated.
        wx2h=n(ks[5], (NUM_UNITS, INPUT_VALUE, 3 * HIDDEN), 0.01),
        wh2h=n(ks[6], (NUM_UNITS, HIDDEN, 3 * HIDDEN), 0.01),
        wq_=n(ks[7], (NUM_UNITS, HIDDEN, NUM_COMM_HEADS * COMM_QUERY), 0.01),
        wk_=n(ks[8], (NUM_UNITS, HIDDEN, NUM_COMM_HEADS * COMM_KEY), 0.01),
        wv_=n(ks[9], (NUM_UNITS, HIDDEN, NUM_COMM_HEADS * COMM_VALUE), 0.01),
        wo=0.01 * jax.random.normal(
            jax.random.fold_in(key, 99),
            (NUM_UNITS, NUM_COMM_HEADS * COMM_VALUE, COMM_VALUE), F32),
    )


if __name__ == "__main__":
    root = jax.random.PRNGKey(0)
    kx, kh, kp = jax.random.split(root, 3)
    x = jax.random.normal(kx, (B, 1, INPUT_SIZE), F32)
    hs = jax.random.normal(kh, (B, NUM_UNITS, HIDDEN), F32)
    params = _init_params(kp)
    packed = pack_params(params)          # one-time host-side block-diag packing

    hs_new, cs_new = rim_cell_forward(x, hs, packed)
    hs_new = jax.block_until_ready(hs_new)

    hs_ref = jax.block_until_ready(rim_reference(x, hs, params))
    assert hs_new.shape == (B, NUM_UNITS, HIDDEN)
    assert cs_new is None
    assert jnp.allclose(hs_new, hs_ref, rtol=1e-2, atol=2e-3), "mismatch vs reference"

    print("KERNEL_OK")
</pallas_src>

<mosaic_0001>
module attributes {stable_mosaic.version = 11 : i64} {
  func.func @_rim_fused_kernel(%arg0: memref<2x16xf32, #tpu.memory_space<vmem>>, %arg1: memref<2x128xf32, #tpu.memory_space<vmem>>, %arg2: memref<16x16xf32, #tpu.memory_space<vmem>>, %arg3: memref<1x16xf32, #tpu.memory_space<vmem>>, %arg4: memref<16x32xf32, #tpu.memory_space<vmem>>, %arg5: memref<1x32xf32, #tpu.memory_space<vmem>>, %arg6: memref<128x64xf32, #tpu.memory_space<vmem>>, %arg7: memref<128x384xf32, #tpu.memory_space<vmem>>, %arg8: memref<128x384xf32, #tpu.memory_space<vmem>>, %arg9: memref<2x128x64xf32, #tpu.memory_space<vmem>>, %arg10: memref<2x128x64xf32, #tpu.memory_space<vmem>>, %arg11: memref<2x128x128xf32, #tpu.memory_space<vmem>>, %arg12: memref<2x128x128xf32, #tpu.memory_space<vmem>>, %arg13: memref<2x128xf32, #tpu.memory_space<vmem>>) attributes {dimension_semantics = [], scalar_prefetch = 0 : i64, scratch_operands = 0 : i64, tpu.core_type = #tpu.core_type<tc>} {
    %c0 = arith.constant 0 : index
    %c0_0 = arith.constant 0 : index
    %0 = vector.load %arg0[%c0, %c0_0] : memref<2x16xf32, #tpu.memory_space<vmem>>, vector<2x16xf32>
    %c0_1 = arith.constant 0 : index
    %c0_2 = arith.constant 0 : index
    %1 = vector.load %arg1[%c0_1, %c0_2] : memref<2x128xf32, #tpu.memory_space<vmem>>, vector<2x128xf32>
    %2 = tpu.iota {dimensions = array<i32: 0>} : vector<64x4xi32>
    %3 = tpu.iota {dimensions = array<i32: 1>} : vector<64x4xi32>
    %c16_i32 = arith.constant 16 : i32
    %4 = vector.broadcast %c16_i32 : i32 to vector<64x4xi32>
    %5 = arith.muli %3, %4 : vector<64x4xi32>
    %6 = arith.cmpi sge, %2, %5 : vector<64x4xi32>
    %c1_i32 = arith.constant 1 : i32
    %7 = vector.broadcast %c1_i32 : i32 to vector<64x4xi32>
    %8 = arith.addi %3, %7 : vector<64x4xi32>
    %c16_i32_3 = arith.constant 16 : i32
    %9 = vector.broadcast %c16_i32_3 : i32 to vector<64x4xi32>
    %10 = arith.muli %8, %9 : vector<64x4xi32>
    %11 = arith.cmpi slt, %2, %10 : vector<64x4xi32>
    %12 = arith.andi %6, %11 : vector<64x4xi1>
    %13 = arith.extui %12 : vector<64x4xi1> to vector<64x4xi32>
    %14 = arith.sitofp %13 : vector<64x4xi32> to vector<64x4xf32>
    %15 = tpu.iota {dimensions = array<i32: 0>} : vector<4x128xi32>
    %16 = tpu.iota {dimensions = array<i32: 1>} : vector<4x128xi32>
    %c32_i32 = arith.constant 32 : i32
    %17 = vector.broadcast %c32_i32 : i32 to vector<4x128xi32>
    %18 = arith.muli %15, %17 : vector<4x128xi32>
    %19 = arith.cmpi sge, %16, %18 : vector<4x128xi32>
    %c1_i32_4 = arith.constant 1 : i32
    %20 = vector.broadcast %c1_i32_4 : i32 to vector<4x128xi32>
    %21 = arith.addi %15, %20 : vector<4x128xi32>
    %c32_i32_5 = arith.constant 32 : i32
    %22 = vector.broadcast %c32_i32_5 : i32 to vector<4x128xi32>
    %23 = arith.muli %21, %22 : vector<4x128xi32>
    %24 = arith.cmpi slt, %16, %23 : vector<4x128xi32>
    %25 = arith.andi %19, %24 : vector<4x128xi1>
    %26 = arith.extui %25 : vector<4x128xi1> to vector<4x128xi32>
    %27 = arith.sitofp %26 : vector<4x128xi32> to vector<4x128xf32>
    %c0_6 = arith.constant 0 : index
    %c0_7 = arith.constant 0 : index
    %28 = vector.load %arg2[%c0_6, %c0_7] : memref<16x16xf32, #tpu.memory_space<vmem>>, vector<16x16xf32>
    %cst = arith.constant dense<0.000000e+00> : vector<2x16xf32>
    %29 = tpu.matmul %0, %28, %cst {dimension_numbers = #tpu.dot_dimension_numbers<[1], [0], [0], [1], [0, 0, 1, 1], [], []>} : vector<2x16xf32>, vector<16x16xf32>, vector<2x16xf32> -> vector<2x16xf32>
    %c0_8 = arith.constant 0 : index
    %c0_9 = arith.constant 0 : index
    %30 = vector.load %arg3[%c0_8, %c0_9] : memref<1x16xf32, #tpu.memory_space<vmem>>, vector<1x16xf32>
    %31 = vector.broadcast %30 : vector<1x16xf32> to vector<2x16xf32>
    %32 = arith.addf %29, %31 : vector<2x16xf32>
    %c0_10 = arith.constant 0 : index
    %c0_11 = arith.constant 0 : index
    %33 = vector.load %arg4[%c0_10, %c0_11] : memref<16x32xf32, #tpu.memory_space<vmem>>, vector<16x32xf32>
    %cst_12 = arith.constant dense<0.000000e+00> : vector<2x32xf32>
    %34 = tpu.matmul %0, %33, %cst_12 {dimension_numbers = #tpu.dot_dimension_numbers<[1], [0], [0], [1], [0, 0, 1, 1], [], []>} : vector<2x16xf32>, vector<16x32xf32>, vector<2x32xf32> -> vector<2x32xf32>
    %c0_13 = arith.constant 0 : index
    %c0_14 = arith.constant 0 : index
    %35 = vector.load %arg5[%c0_13, %c0_14] : memref<1x32xf32, #tpu.memory_space<vmem>>, vector<1x32xf32>
    %36 = vector.broadcast %35 : vector<1x32xf32> to vector<2x32xf32>
    %37 = arith.addf %34, %36 : vector<2x32xf32>
    %c0_15 = arith.constant 0 : index
    %c0_16 = arith.constant 0 : index
    %38 = vector.load %arg3[%c0_15, %c0_16] : memref<1x16xf32, #tpu.memory_space<vmem>>, vector<1x16xf32>
    %c0_17 = arith.constant 0 : index
    %c0_18 = arith.constant 0 : index
    %39 = vector.load %arg5[%c0_17, %c0_18] : memref<1x32xf32, #tpu.memory_space<vmem>>, vector<1x32xf32>
    %c0_19 = arith.constant 0 : index
    %c0_20 = arith.constant 0 : index
    %40 = vector.load %arg6[%c0_19, %c0_20] : memref<128x64xf32, #tpu.memory_space<vmem>>, vector<128x64xf32>
    %cst_21 = arith.constant dense<0.000000e+00> : vector<2x64xf32>
    %41 = tpu.matmul %1, %40, %cst_21 {dimension_numbers = #tpu.dot_dimension_numbers<[1], [0], [0], [1], [0, 0, 1, 1], [], []>} : vector<2x128xf32>, vector<128x64xf32>, vector<2x64xf32> -> vector<2x64xf32>
    %42 = tpu.concatenate %32, %32, %32, %32 in 1 : vector<2x16xf32>, vector<2x16xf32>, vector<2x16xf32>, vector<2x16xf32> -> vector<2x64xf32>
    %43 = arith.mulf %41, %42 : vector<2x64xf32>
    %cst_22 = arith.constant dense<0.000000e+00> : vector<2x4xf32>
    %44 = tpu.matmul %43, %14, %cst_22 {dimension_numbers = #tpu.dot_dimension_numbers<[1], [0], [0], [1], [0, 0, 1, 1], [], []>} : vector<2x64xf32>, vector<64x4xf32>, vector<2x4xf32> -> vector<2x4xf32>
    %cst_23 = arith.constant 2.500000e-01 : f32
    %45 = vector.broadcast %cst_23 : f32 to vector<2x4xf32>
    %46 = arith.mulf %44, %45 : vector<2x4xf32>
    %47 = tpu.concatenate %38, %38, %38, %38 in 1 : vector<1x16xf32>, vector<1x16xf32>, vector<1x16xf32>, vector<1x16xf32> -> vector<1x64xf32>
    %48 = vector.broadcast %47 : vector<1x64xf32> to vector<2x64xf32>
    %49 = arith.mulf %41, %48 : vector<2x64xf32>
    %cst_24 = arith.constant dense<0.000000e+00> : vector<2x4xf32>
    %50 = tpu.matmul %49, %14, %cst_24 {dimension_numbers = #tpu.dot_dimension_numbers<[1], [0], [0], [1], [0, 0, 1, 1], [], []>} : vector<2x64xf32>, vector<64x4xf32>, vector<2x4xf32> -> vector<2x4xf32>
    %cst_25 = arith.constant 2.500000e-01 : f32
    %51 = vector.broadcast %cst_25 : f32 to vector<2x4xf32>
    %52 = arith.mulf %50, %51 : vector<2x4xf32>
    %53 = tpu.iota {dimensions = array<i32: 1>} : vector<1x4xi32>
    %cst_26 = arith.constant 0.000000e+00 : f32
    %54 = vector.broadcast %cst_26 : f32 to vector<2x4xf32>
    %55 = vector.extract_strided_slice %46 {offsets = [0, 0], sizes = [2, 1], strides = [1, 1]} : vector<2x4xf32> to vector<2x1xf32>
    %56 = vector.broadcast %55 : vector<2x1xf32> to vector<2x4xf32>
    %57 = arith.cmpf ogt, %56, %46 : vector<2x4xf32>
    %58 = vector.broadcast %55 : vector<2x1xf32> to vector<2x4xf32>
    %59 = arith.cmpf oeq, %58, %46 : vector<2x4xf32>
    %c0_i32 = arith.constant 0 : i32
    %60 = vector.broadcast %c0_i32 : i32 to vector<1x4xi32>
    %61 = arith.cmpi sgt, %53, %60 : vector<1x4xi32>
    %62 = vector.broadcast %61 : vector<1x4xi1> to vector<2x4xi1>
    %63 = arith.andi %59, %62 : vector<2x4xi1>
    %64 = arith.ori %57, %63 : vector<2x4xi1>
    %65 = arith.extui %64 : vector<2x4xi1> to vector<2x4xi32>
    %66 = arith.sitofp %65 : vector<2x4xi32> to vector<2x4xf32>
    %67 = arith.addf %54, %66 : vector<2x4xf32>
    %68 = vector.extract_strided_slice %46 {offsets = [0, 1], sizes = [2, 1], strides = [1, 1]} : vector<2x4xf32> to vector<2x1xf32>
    %69 = vector.broadcast %68 : vector<2x1xf32> to vector<2x4xf32>
    %70 = arith.cmpf ogt, %69, %46 : vector<2x4xf32>
    %71 = vector.broadcast %68 : vector<2x1xf32> to vector<2x4xf32>
    %72 = arith.cmpf oeq, %71, %46 : vector<2x4xf32>
    %c1_i32_27 = arith.constant 1 : i32
    %73 = vector.broadcast %c1_i32_27 : i32 to vector<1x4xi32>
    %74 = arith.cmpi sgt, %53, %73 : vector<1x4xi32>
    %75 = vector.broadcast %74 : vector<1x4xi1> to vector<2x4xi1>
    %76 = arith.andi %72, %75 : vector<2x4xi1>
    %77 = arith.ori %70, %76 : vector<2x4xi1>
    %78 = arith.extui %77 : vector<2x4xi1> to vector<2x4xi32>
    %79 = arith.sitofp %78 : vector<2x4xi32> to vector<2x4xf32>
    %80 = arith.addf %67, %79 : vector<2x4xf32>
    %81 = vector.extract_strided_slice %46 {offsets = [0, 2], sizes = [2, 1], strides = [1, 1]} : vector<2x4xf32> to vector<2x1xf32>
    %82 = vector.broadcast %81 : vector<2x1xf32> to vector<2x4xf32>
    %83 = arith.cmpf ogt, %82, %46 : vector<2x4xf32>
    %84 = vector.broadcast %81 : vector<2x1xf32> to vector<2x4xf32>
    %85 = arith.cmpf oeq, %84, %46 : vector<2x4xf32>
    %c2_i32 = arith.constant 2 : i32
    %86 = vector.broadcast %c2_i32 : i32 to vector<1x4xi32>
    %87 = arith.cmpi sgt, %53, %86 : vector<1x4xi32>
    %88 = vector.broadcast %87 : vector<1x4xi1> to vector<2x4xi1>
    %89 = arith.andi %85, %88 : vector<2x4xi1>
    %90 = arith.ori %83, %89 : vector<2x4xi1>
    %91 = arith.extui %90 : vector<2x4xi1> to vector<2x4xi32>
    %92 = arith.sitofp %91 : vector<2x4xi32> to vector<2x4xf32>
    %93 = arith.addf %80, %92 : vector<2x4xf32>
    %94 = vector.extract_strided_slice %46 {offsets = [0, 3], sizes = [2, 1], strides = [1, 1]} : vector<2x4xf32> to vector<2x1xf32>
    %95 = vector.broadcast %94 : vector<2x1xf32> to vector<2x4xf32>
    %96 = arith.cmpf ogt, %95, %46 : vector<2x4xf32>
    %97 = vector.broadcast %94 : vector<2x1xf32> to vector<2x4xf32>
    %98 = arith.cmpf oeq, %97, %46 : vector<2x4xf32>
    %c3_i32 = arith.constant 3 : i32
    %99 = vector.broadcast %c3_i32 : i32 to vector<1x4xi32>
    %100 = arith.cmpi sgt, %53, %99 : vector<1x4xi32>
    %101 = vector.broadcast %100 : vector<1x4xi1> to vector<2x4xi1>
    %102 = arith.andi %98, %101 : vector<2x4xi1>
    %103 = arith.ori %96, %102 : vector<2x4xi1>
    %104 = arith.extui %103 : vector<2x4xi1> to vector<2x4xi32>
    %105 = arith.sitofp %104 : vector<2x4xi32> to vector<2x4xf32>
    %106 = arith.addf %93, %105 : vector<2x4xf32>
    %cst_28 = arith.constant 2.000000e+00 : f32
    %107 = vector.broadcast %cst_28 : f32 to vector<2x4xf32>
    %108 = arith.cmpf olt, %106, %107 : vector<2x4xf32>
    %109 = arith.extui %108 : vector<2x4xi1> to vector<2x4xi32>
    %110 = arith.sitofp %109 : vector<2x4xi32> to vector<2x4xf32>
    %111 = arith.maximumf %46, %52 : vector<2x4xf32>
    %112 = arith.subf %46, %111 : vector<2x4xf32>
    %113 = math.exp %112 : vector<2x4xf32>
    %114 = arith.subf %52, %111 : vector<2x4xf32>
    %115 = math.exp %114 : vector<2x4xf32>
    %116 = arith.addf %113, %115 : vector<2x4xf32>
    %117 = tpu.reciprocal %116 {approx = true} : vector<2x4xf32> -> vector<2x4xf32>
    %118 = arith.mulf %113, %117 : vector<2x4xf32>
    %119 = arith.mulf %118, %110 : vector<2x4xf32>
    %120 = arith.mulf %115, %117 : vector<2x4xf32>
    %121 = arith.mulf %120, %110 : vector<2x4xf32>
    %cst_29 = arith.constant dense<0.000000e+00> : vector<2x128xf32>
    %122 = tpu.matmul %119, %27, %cst_29 {dimension_numbers = #tpu.dot_dimension_numbers<[1], [0], [0], [1], [0, 0, 1, 1], [], []>} : vector<2x4xf32>, vector<4x128xf32>, vector<2x128xf32> -> vector<2x128xf32>
    %123 = tpu.concatenate %37, %37, %37, %37 in 1 : vector<2x32xf32>, vector<2x32xf32>, vector<2x32xf32>, vector<2x32xf32> -> vector<2x128xf32>
    %124 = arith.mulf %122, %123 : vector<2x128xf32>
    %cst_30 = arith.constant dense<0.000000e+00> : vector<2x128xf32>
    %125 = tpu.matmul %121, %27, %cst_30 {dimension_numbers = #tpu.dot_dimension_numbers<[1], [0], [0], [1], [0, 0, 1, 1], [], []>} : vector<2x4xf32>, vector<4x128xf32>, vector<2x128xf32> -> vector<2x128xf32>
    %126 = tpu.concatenate %39, %39, %39, %39 in 1 : vector<1x32xf32>, vector<1x32xf32>, vector<1x32xf32>, vector<1x32xf32> -> vector<1x128xf32>
    %127 = vector.broadcast %126 : vector<1x128xf32> to vector<2x128xf32>
    %128 = arith.mulf %125, %127 : vector<2x128xf32>
    %129 = arith.addf %124, %128 : vector<2x128xf32>
    %c0_31 = arith.constant 0 : index
    %c0_32 = arith.constant 0 : index
    %130 = vector.load %arg7[%c0_31, %c0_32] : memref<128x384xf32, #tpu.memory_space<vmem>>, vector<128x384xf32>
    %cst_33 = arith.constant dense<0.000000e+00> : vector<2x384xf32>
    %131 = tpu.matmul %129, %130, %cst_33 {dimension_numbers = #tpu.dot_dimension_numbers<[1], [0], [0], [1], [0, 0, 1, 1], [], []>} : vector<2x128xf32>, vector<128x384xf32>, vector<2x384xf32> -> vector<2x384xf32>
    %c0_34 = arith.constant 0 : index
    %c0_35 = arith.constant 0 : index
    %132 = vector.load %arg8[%c0_34, %c0_35] : memref<128x384xf32, #tpu.memory_space<vmem>>, vector<128x384xf32>
    %cst_36 = arith.constant dense<0.000000e+00> : vector<2x384xf32>
    %133 = tpu.matmul %1, %132, %cst_36 {dimension_numbers = #tpu.dot_dimension_numbers<[1], [0], [0], [1], [0, 0, 1, 1], [], []>} : vector<2x128xf32>, vector<128x384xf32>, vector<2x384xf32> -> vector<2x384xf32>
    %134 = vector.extract_strided_slice %131 {offsets = [0, 0], sizes = [2, 128], strides = [1, 1]} : vector<2x384xf32> to vector<2x128xf32>
    %135 = vector.extract_strided_slice %133 {offsets = [0, 0], sizes = [2, 128], strides = [1, 1]} : vector<2x384xf32> to vector<2x128xf32>
    %136 = arith.addf %134, %135 : vector<2x128xf32>
    %137 = arith.negf %136 : vector<2x128xf32>
    %138 = math.exp %137 : vector<2x128xf32>
    %cst_37 = arith.constant 1.000000e+00 : f32
    %139 = vector.broadcast %cst_37 : f32 to vector<2x128xf32>
    %140 = arith.addf %139, %138 : vector<2x128xf32>
    %141 = arith.divf %139, %140 : vector<2x128xf32>
    %142 = vector.extract_strided_slice %131 {offsets = [0, 128], sizes = [2, 128], strides = [1, 1]} : vector<2x384xf32> to vector<2x128xf32>
    %143 = vector.extract_strided_slice %133 {offsets = [0, 128], sizes = [2, 128], strides = [1, 1]} : vector<2x384xf32> to vector<2x128xf32>
    %144 = arith.addf %142, %143 : vector<2x128xf32>
    %145 = arith.negf %144 : vector<2x128xf32>
    %146 = math.exp %145 : vector<2x128xf32>
    %cst_38 = arith.constant 1.000000e+00 : f32
    %147 = vector.broadcast %cst_38 : f32 to vector<2x128xf32>
    %148 = arith.addf %147, %146 : vector<2x128xf32>
    %149 = arith.divf %147, %148 : vector<2x128xf32>
    %150 = vector.extract_strided_slice %131 {offsets = [0, 256], sizes = [2, 128], strides = [1, 1]} : vector<2x384xf32> to vector<2x128xf32>
    %151 = vector.extract_strided_slice %133 {offsets = [0, 256], sizes = [2, 128], strides = [1, 1]} : vector<2x384xf32> to vector<2x128xf32>
    %152 = arith.mulf %141, %151 : vector<2x128xf32>
    %153 = arith.addf %150, %152 : vector<2x128xf32>
    %154 = math.tanh %153 : vector<2x128xf32>
    %155 = arith.subf %1, %154 : vector<2x128xf32>
    %156 = arith.mulf %149, %155 : vector<2x128xf32>
    %157 = arith.addf %154, %156 : vector<2x128xf32>
    %cst_39 = arith.constant 0.000000e+00 : f32
    %158 = vector.broadcast %cst_39 : f32 to vector<2x128xf32>
    %c0_40 = arith.constant 0 : index
    %c0_41 = arith.constant 0 : index
    %c0_42 = arith.constant 0 : index
    %159 = vector.load %arg9[%c0_40, %c0_41, %c0_42] : memref<2x128x64xf32, #tpu.memory_space<vmem>>, vector<1x128x64xf32>
    %160 = vector.shape_cast %159 : vector<1x128x64xf32> to vector<128x64xf32>
    %cst_43 = arith.constant dense<0.000000e+00> : vector<2x64xf32>
    %161 = tpu.matmul %157, %160, %cst_43 {dimension_numbers = #tpu.dot_dimension_numbers<[1], [0], [0], [1], [0, 0, 1, 1], [], []>} : vector<2x128xf32>, vector<128x64xf32>, vector<2x64xf32> -> vector<2x64xf32>
    %c0_44 = arith.constant 0 : index
    %c0_45 = arith.constant 0 : index
    %c0_46 = arith.constant 0 : index
    %162 = vector.load %arg10[%c0_44, %c0_45, %c0_46] : memref<2x128x64xf32, #tpu.memory_space<vmem>>, vector<1x128x64xf32>
    %163 = vector.shape_cast %162 : vector<1x128x64xf32> to vector<128x64xf32>
    %cst_47 = arith.constant dense<0.000000e+00> : vector<2x64xf32>
    %164 = tpu.matmul %157, %163, %cst_47 {dimension_numbers = #tpu.dot_dimension_numbers<[1], [0], [0], [1], [0, 0, 1, 1], [], []>} : vector<2x128xf32>, vector<128x64xf32>, vector<2x64xf32> -> vector<2x64xf32>
    %c0_48 = arith.constant 0 : index
    %c0_49 = arith.constant 0 : index
    %c0_50 = arith.constant 0 : index
    %165 = vector.load %arg11[%c0_48, %c0_49, %c0_50] : memref<2x128x128xf32, #tpu.memory_space<vmem>>, vector<1x128x128xf32>
    %166 = vector.shape_cast %165 : vector<1x128x128xf32> to vector<128x128xf32>
    %cst_51 = arith.constant dense<0.000000e+00> : vector<2x128xf32>
    %167 = tpu.matmul %157, %166, %cst_51 {dimension_numbers = #tpu.dot_dimension_numbers<[1], [0], [0], [1], [0, 0, 1, 1], [], []>} : vector<2x128xf32>, vector<128x128xf32>, vector<2x128xf32> -> vector<2x128xf32>
    %168 = vector.extract_strided_slice %164 {offsets = [0, 0], sizes = [2, 16], strides = [1, 1]} : vector<2x64xf32> to vector<2x16xf32>
    %169 = tpu.concatenate %168, %168, %168, %168 in 1 : vector<2x16xf32>, vector<2x16xf32>, vector<2x16xf32>, vector<2x16xf32> -> vector<2x64xf32>
    %170 = arith.mulf %161, %169 : vector<2x64xf32>
    %cst_52 = arith.constant dense<0.000000e+00> : vector<2x4xf32>
    %171 = tpu.matmul %170, %14, %cst_52 {dimension_numbers = #tpu.dot_dimension_numbers<[1], [0], [0], [1], [0, 0, 1, 1], [], []>} : vector<2x64xf32>, vector<64x4xf32>, vector<2x4xf32> -> vector<2x4xf32>
    %cst_53 = arith.constant 2.500000e-01 : f32
    %172 = vector.broadcast %cst_53 : f32 to vector<2x4xf32>
    %173 = arith.mulf %171, %172 : vector<2x4xf32>
    %174 = vector.extract_strided_slice %164 {offsets = [0, 16], sizes = [2, 16], strides = [1, 1]} : vector<2x64xf32> to vector<2x16xf32>
    %175 = tpu.concatenate %174, %174, %174, %174 in 1 : vector<2x16xf32>, vector<2x16xf32>, vector<2x16xf32>, vector<2x16xf32> -> vector<2x64xf32>
    %176 = arith.mulf %161, %175 : vector<2x64xf32>
    %cst_54 = arith.constant dense<0.000000e+00> : vector<2x4xf32>
    %177 = tpu.matmul %176, %14, %cst_54 {dimension_numbers = #tpu.dot_dimension_numbers<[1], [0], [0], [1], [0, 0, 1, 1], [], []>} : vector<2x64xf32>, vector<64x4xf32>, vector<2x4xf32> -> vector<2x4xf32>
    %cst_55 = arith.constant 2.500000e-01 : f32
    %178 = vector.broadcast %cst_55 : f32 to vector<2x4xf32>
    %179 = arith.mulf %177, %178 : vector<2x4xf32>
    %180 = vector.extract_strided_slice %164 {offsets = [0, 32], sizes = [2, 16], strides = [1, 1]} : vector<2x64xf32> to vector<2x16xf32>
    %181 = tpu.concatenate %180, %180, %180, %180 in 1 : vector<2x16xf32>, vector<2x16xf32>, vector<2x16xf32>, vector<2x16xf32> -> vector<2x64xf32>
    %182 = arith.mulf %161, %181 : vector<2x64xf32>
    %cst_56 = arith.constant dense<0.000000e+00> : vector<2x4xf32>
    %183 = tpu.matmul %182, %14, %cst_56 {dimension_numbers = #tpu.dot_dimension_numbers<[1], [0], [0], [1], [0, 0, 1, 1], [], []>} : vector<2x64xf32>, vector<64x4xf32>, vector<2x4xf32> -> vector<2x4xf32>
    %cst_57 = arith.constant 2.500000e-01 : f32
    %184 = vector.broadcast %cst_57 : f32 to vector<2x4xf32>
    %185 = arith.mulf %183, %184 : vector<2x4xf32>
    %186 = vector.extract_strided_slice %164 {offsets = [0, 48], sizes = [2, 16], strides = [1, 1]} : vector<2x64xf32> to vector<2x16xf32>
    %187 = tpu.concatenate %186, %186, %186, %186 in 1 : vector<2x16xf32>, vector<2x16xf32>, vector<2x16xf32>, vector<2x16xf32> -> vector<2x64xf32>
    %188 = arith.mulf %161, %187 : vector<2x64xf32>
    %cst_58 = arith.constant dense<0.000000e+00> : vector<2x4xf32>
    %189 = tpu.matmul %188, %14, %cst_58 {dimension_numbers = #tpu.dot_dimension_numbers<[1], [0], [0], [1], [0, 0, 1, 1], [], []>} : vector<2x64xf32>, vector<64x4xf32>, vector<2x4xf32> -> vector<2x4xf32>
    %cst_59 = arith.constant 2.500000e-01 : f32
    %190 = vector.broadcast %cst_59 : f32 to vector<2x4xf32>
    %191 = arith.mulf %189, %190 : vector<2x4xf32>
    %192 = arith.maximumf %173, %179 : vector<2x4xf32>
    %193 = arith.maximumf %192, %185 : vector<2x4xf32>
    %194 = arith.maximumf %193, %191 : vector<2x4xf32>
    %195 = arith.subf %173, %194 : vector<2x4xf32>
    %196 = math.exp %195 : vector<2x4xf32>
    %197 = arith.subf %179, %194 : vector<2x4xf32>
    %198 = math.exp %197 : vector<2x4xf32>
    %199 = arith.subf %185, %194 : vector<2x4xf32>
    %200 = math.exp %199 : vector<2x4xf32>
    %201 = arith.subf %191, %194 : vector<2x4xf32>
    %202 = math.exp %201 : vector<2x4xf32>
    %203 = arith.addf %196, %198 : vector<2x4xf32>
    %204 = arith.addf %203, %200 : vector<2x4xf32>
    %205 = arith.addf %204, %202 : vector<2x4xf32>
    %206 = tpu.reciprocal %205 {approx = true} : vector<2x4xf32> -> vector<2x4xf32>
    %cst_60 = arith.constant 0.000000e+00 : f32
    %207 = vector.broadcast %cst_60 : f32 to vector<2x128xf32>
    %208 = arith.mulf %196, %206 : vector<2x4xf32>
    %209 = arith.mulf %208, %110 : vector<2x4xf32>
    %210 = vector.extract_strided_slice %167 {offsets = [0, 0], sizes = [2, 32], strides = [1, 1]} : vector<2x128xf32> to vector<2x32xf32>
    %cst_61 = arith.constant dense<0.000000e+00> : vector<2x128xf32>
    %211 = tpu.matmul %209, %27, %cst_61 {dimension_numbers = #tpu.dot_dimension_numbers<[1], [0], [0], [1], [0, 0, 1, 1], [], []>} : vector<2x4xf32>, vector<4x128xf32>, vector<2x128xf32> -> vector<2x128xf32>
    %212 = tpu.concatenate %210, %210, %210, %210 in 1 : vector<2x32xf32>, vector<2x32xf32>, vector<2x32xf32>, vector<2x32xf32> -> vector<2x128xf32>
    %213 = arith.mulf %211, %212 : vector<2x128xf32>
    %214 = arith.addf %207, %213 : vector<2x128xf32>
    %215 = arith.mulf %198, %206 : vector<2x4xf32>
    %216 = arith.mulf %215, %110 : vector<2x4xf32>
    %217 = vector.extract_strided_slice %167 {offsets = [0, 32], sizes = [2, 32], strides = [1, 1]} : vector<2x128xf32> to vector<2x32xf32>
    %cst_62 = arith.constant dense<0.000000e+00> : vector<2x128xf32>
    %218 = tpu.matmul %216, %27, %cst_62 {dimension_numbers = #tpu.dot_dimension_numbers<[1], [0], [0], [1], [0, 0, 1, 1], [], []>} : vector<2x4xf32>, vector<4x128xf32>, vector<2x128xf32> -> vector<2x128xf32>
    %219 = tpu.concatenate %217, %217, %217, %217 in 1 : vector<2x32xf32>, vector<2x32xf32>, vector<2x32xf32>, vector<2x32xf32> -> vector<2x128xf32>
    %220 = arith.mulf %218, %219 : vector<2x128xf32>
    %221 = arith.addf %214, %220 : vector<2x128xf32>
    %222 = arith.mulf %200, %206 : vector<2x4xf32>
    %223 = arith.mulf %222, %110 : vector<2x4xf32>
    %224 = vector.extract_strided_slice %167 {offsets = [0, 64], sizes = [2, 32], strides = [1, 1]} : vector<2x128xf32> to vector<2x32xf32>
    %cst_63 = arith.constant dense<0.000000e+00> : vector<2x128xf32>
    %225 = tpu.matmul %223, %27, %cst_63 {dimension_numbers = #tpu.dot_dimension_numbers<[1], [0], [0], [1], [0, 0, 1, 1], [], []>} : vector<2x4xf32>, vector<4x128xf32>, vector<2x128xf32> -> vector<2x128xf32>
    %226 = tpu.concatenate %224, %224, %224, %224 in 1 : vector<2x32xf32>, vector<2x32xf32>, vector<2x32xf32>, vector<2x32xf32> -> vector<2x128xf32>
    %227 = arith.mulf %225, %226 : vector<2x128xf32>
    %228 = arith.addf %221, %227 : vector<2x128xf32>
    %229 = arith.mulf %202, %206 : vector<2x4xf32>
    %230 = arith.mulf %229, %110 : vector<2x4xf32>
    %231 = vector.extract_strided_slice %167 {offsets = [0, 96], sizes = [2, 32], strides = [1, 1]} : vector<2x128xf32> to vector<2x32xf32>
    %cst_64 = arith.constant dense<0.000000e+00> : vector<2x128xf32>
    %232 = tpu.matmul %230, %27, %cst_64 {dimension_numbers = #tpu.dot_dimension_numbers<[1], [0], [0], [1], [0, 0, 1, 1], [], []>} : vector<2x4xf32>, vector<4x128xf32>, vector<2x128xf32> -> vector<2x128xf32>
    %233 = tpu.concatenate %231, %231, %231, %231 in 1 : vector<2x32xf32>, vector<2x32xf32>, vector<2x32xf32>, vector<2x32xf32> -> vector<2x128xf32>
    %234 = arith.mulf %232, %233 : vector<2x128xf32>
    %235 = arith.addf %228, %234 : vector<2x128xf32>
    %c0_65 = arith.constant 0 : index
    %c0_66 = arith.constant 0 : index
    %c0_67 = arith.constant 0 : index
    %236 = vector.load %arg12[%c0_65, %c0_66, %c0_67] : memref<2x128x128xf32, #tpu.memory_space<vmem>>, vector<1x128x128xf32>
    %237 = vector.shape_cast %236 : vector<1x128x128xf32> to vector<128x128xf32>
    %cst_68 = arith.constant dense<0.000000e+00> : vector<2x128xf32>
    %238 = tpu.matmul %235, %237, %cst_68 {dimension_numbers = #tpu.dot_dimension_numbers<[1], [0], [0], [1], [0, 0, 1, 1], [], []>} : vector<2x128xf32>, vector<128x128xf32>, vector<2x128xf32> -> vector<2x128xf32>
    %239 = arith.addf %158, %238 : vector<2x128xf32>
    %c1 = arith.constant 1 : index
    %c0_69 = arith.constant 0 : index
    %c0_70 = arith.constant 0 : index
    %240 = vector.load %arg9[%c1, %c0_69, %c0_70] : memref<2x128x64xf32, #tpu.memory_space<vmem>>, vector<1x128x64xf32>
    %241 = vector.shape_cast %240 : vector<1x128x64xf32> to vector<128x64xf32>
    %cst_71 = arith.constant dense<0.000000e+00> : vector<2x64xf32>
    %242 = tpu.matmul %157, %241, %cst_71 {dimension_numbers = #tpu.dot_dimension_numbers<[1], [0], [0], [1], [0, 0, 1, 1], [], []>} : vector<2x128xf32>, vector<128x64xf32>, vector<2x64xf32> -> vector<2x64xf32>
    %c1_72 = arith.constant 1 : index
    %c0_73 = arith.constant 0 : index
    %c0_74 = arith.constant 0 : index
    %243 = vector.load %arg10[%c1_72, %c0_73, %c0_74] : memref<2x128x64xf32, #tpu.memory_space<vmem>>, vector<1x128x64xf32>
    %244 = vector.shape_cast %243 : vector<1x128x64xf32> to vector<128x64xf32>
    %cst_75 = arith.constant dense<0.000000e+00> : vector<2x64xf32>
    %245 = tpu.matmul %157, %244, %cst_75 {dimension_numbers = #tpu.dot_dimension_numbers<[1], [0], [0], [1], [0, 0, 1, 1], [], []>} : vector<2x128xf32>, vector<128x64xf32>, vector<2x64xf32> -> vector<2x64xf32>
    %c1_76 = arith.constant 1 : index
    %c0_77 = arith.constant 0 : index
    %c0_78 = arith.constant 0 : index
    %246 = vector.load %arg11[%c1_76, %c0_77, %c0_78] : memref<2x128x128xf32, #tpu.memory_space<vmem>>, vector<1x128x128xf32>
    %247 = vector.shape_cast %246 : vector<1x128x128xf32> to vector<128x128xf32>
    %cst_79 = arith.constant dense<0.000000e+00> : vector<2x128xf32>
    %248 = tpu.matmul %157, %247, %cst_79 {dimension_numbers = #tpu.dot_dimension_numbers<[1], [0], [0], [1], [0, 0, 1, 1], [], []>} : vector<2x128xf32>, vector<128x128xf32>, vector<2x128xf32> -> vector<2x128xf32>
    %249 = vector.extract_strided_slice %245 {offsets = [0, 0], sizes = [2, 16], strides = [1, 1]} : vector<2x64xf32> to vector<2x16xf32>
    %250 = tpu.concatenate %249, %249, %249, %249 in 1 : vector<2x16xf32>, vector<2x16xf32>, vector<2x16xf32>, vector<2x16xf32> -> vector<2x64xf32>
    %251 = arith.mulf %242, %250 : vector<2x64xf32>
    %cst_80 = arith.constant dense<0.000000e+00> : vector<2x4xf32>
    %252 = tpu.matmul %251, %14, %cst_80 {dimension_numbers = #tpu.dot_dimension_numbers<[1], [0], [0], [1], [0, 0, 1, 1], [], []>} : vector<2x64xf32>, vector<64x4xf32>, vector<2x4xf32> -> vector<2x4xf32>
    %cst_81 = arith.constant 2.500000e-01 : f32
    %253 = vector.broadcast %cst_81 : f32 to vector<2x4xf32>
    %254 = arith.mulf %252, %253 : vector<2x4xf32>
    %255 = vector.extract_strided_slice %245 {offsets = [0, 16], sizes = [2, 16], strides = [1, 1]} : vector<2x64xf32> to vector<2x16xf32>
    %256 = tpu.concatenate %255, %255, %255, %255 in 1 : vector<2x16xf32>, vector<2x16xf32>, vector<2x16xf32>, vector<2x16xf32> -> vector<2x64xf32>
    %257 = arith.mulf %242, %256 : vector<2x64xf32>
    %cst_82 = arith.constant dense<0.000000e+00> : vector<2x4xf32>
    %258 = tpu.matmul %257, %14, %cst_82 {dimension_numbers = #tpu.dot_dimension_numbers<[1], [0], [0], [1], [0, 0, 1, 1], [], []>} : vector<2x64xf32>, vector<64x4xf32>, vector<2x4xf32> -> vector<2x4xf32>
    %cst_83 = arith.constant 2.500000e-01 : f32
    %259 = vector.broadcast %cst_83 : f32 to vector<2x4xf32>
    %260 = arith.mulf %258, %259 : vector<2x4xf32>
    %261 = vector.extract_strided_slice %245 {offsets = [0, 32], sizes = [2, 16], strides = [1, 1]} : vector<2x64xf32> to vector<2x16xf32>
    %262 = tpu.concatenate %261, %261, %261, %261 in 1 : vector<2x16xf32>, vector<2x16xf32>, vector<2x16xf32>, vector<2x16xf32> -> vector<2x64xf32>
    %263 = arith.mulf %242, %262 : vector<2x64xf32>
    %cst_84 = arith.constant dense<0.000000e+00> : vector<2x4xf32>
    %264 = tpu.matmul %263, %14, %cst_84 {dimension_numbers = #tpu.dot_dimension_numbers<[1], [0], [0], [1], [0, 0, 1, 1], [], []>} : vector<2x64xf32>, vector<64x4xf32>, vector<2x4xf32> -> vector<2x4xf32>
    %cst_85 = arith.constant 2.500000e-01 : f32
    %265 = vector.broadcast %cst_85 : f32 to vector<2x4xf32>
    %266 = arith.mulf %264, %265 : vector<2x4xf32>
    %267 = vector.extract_strided_slice %245 {offsets = [0, 48], sizes = [2, 16], strides = [1, 1]} : vector<2x64xf32> to vector<2x16xf32>
    %268 = tpu.concatenate %267, %267, %267, %267 in 1 : vector<2x16xf32>, vector<2x16xf32>, vector<2x16xf32>, vector<2x16xf32> -> vector<2x64xf32>
    %269 = arith.mulf %242, %268 : vector<2x64xf32>
    %cst_86 = arith.constant dense<0.000000e+00> : vector<2x4xf32>
    %270 = tpu.matmul %269, %14, %cst_86 {dimension_numbers = #tpu.dot_dimension_numbers<[1], [0], [0], [1], [0, 0, 1, 1], [], []>} : vector<2x64xf32>, vector<64x4xf32>, vector<2x4xf32> -> vector<2x4xf32>
    %cst_87 = arith.constant 2.500000e-01 : f32
    %271 = vector.broadcast %cst_87 : f32 to vector<2x4xf32>
    %272 = arith.mulf %270, %271 : vector<2x4xf32>
    %273 = arith.maximumf %254, %260 : vector<2x4xf32>
    %274 = arith.maximumf %273, %266 : vector<2x4xf32>
    %275 = arith.maximumf %274, %272 : vector<2x4xf32>
    %276 = arith.subf %254, %275 : vector<2x4xf32>
    %277 = math.exp %276 : vector<2x4xf32>
    %278 = arith.subf %260, %275 : vector<2x4xf32>
    %279 = math.exp %278 : vector<2x4xf32>
    %280 = arith.subf %266, %275 : vector<2x4xf32>
    %281 = math.exp %280 : vector<2x4xf32>
    %282 = arith.subf %272, %275 : vector<2x4xf32>
    %283 = math.exp %282 : vector<2x4xf32>
    %284 = arith.addf %277, %279 : vector<2x4xf32>
    %285 = arith.addf %284, %281 : vector<2x4xf32>
    %286 = arith.addf %285, %283 : vector<2x4xf32>
    %287 = tpu.reciprocal %286 {approx = true} : vector<2x4xf32> -> vector<2x4xf32>
    %cst_88 = arith.constant 0.000000e+00 : f32
    %288 = vector.broadcast %cst_88 : f32 to vector<2x128xf32>
    %289 = arith.mulf %277, %287 : vector<2x4xf32>
    %290 = arith.mulf %289, %110 : vector<2x4xf32>
    %291 = vector.extract_strided_slice %248 {offsets = [0, 0], sizes = [2, 32], strides = [1, 1]} : vector<2x128xf32> to vector<2x32xf32>
    %cst_89 = arith.constant dense<0.000000e+00> : vector<2x128xf32>
    %292 = tpu.matmul %290, %27, %cst_89 {dimension_numbers = #tpu.dot_dimension_numbers<[1], [0], [0], [1], [0, 0, 1, 1], [], []>} : vector<2x4xf32>, vector<4x128xf32>, vector<2x128xf32> -> vector<2x128xf32>
    %293 = tpu.concatenate %291, %291, %291, %291 in 1 : vector<2x32xf32>, vector<2x32xf32>, vector<2x32xf32>, vector<2x32xf32> -> vector<2x128xf32>
    %294 = arith.mulf %292, %293 : vector<2x128xf32>
    %295 = arith.addf %288, %294 : vector<2x128xf32>
    %296 = arith.mulf %279, %287 : vector<2x4xf32>
    %297 = arith.mulf %296, %110 : vector<2x4xf32>
    %298 = vector.extract_strided_slice %248 {offsets = [0, 32], sizes = [2, 32], strides = [1, 1]} : vector<2x128xf32> to vector<2x32xf32>
    %cst_90 = arith.constant dense<0.000000e+00> : vector<2x128xf32>
    %299 = tpu.matmul %297, %27, %cst_90 {dimension_numbers = #tpu.dot_dimension_numbers<[1], [0], [0], [1], [0, 0, 1, 1], [], []>} : vector<2x4xf32>, vector<4x128xf32>, vector<2x128xf32> -> vector<2x128xf32>
    %300 = tpu.concatenate %298, %298, %298, %298 in 1 : vector<2x32xf32>, vector<2x32xf32>, vector<2x32xf32>, vector<2x32xf32> -> vector<2x128xf32>
    %301 = arith.mulf %299, %300 : vector<2x128xf32>
    %302 = arith.addf %295, %301 : vector<2x128xf32>
    %303 = arith.mulf %281, %287 : vector<2x4xf32>
    %304 = arith.mulf %303, %110 : vector<2x4xf32>
    %305 = vector.extract_strided_slice %248 {offsets = [0, 64], sizes = [2, 32], strides = [1, 1]} : vector<2x128xf32> to vector<2x32xf32>
    %cst_91 = arith.constant dense<0.000000e+00> : vector<2x128xf32>
    %306 = tpu.matmul %304, %27, %cst_91 {dimension_numbers = #tpu.dot_dimension_numbers<[1], [0], [0], [1], [0, 0, 1, 1], [], []>} : vector<2x4xf32>, vector<4x128xf32>, vector<2x128xf32> -> vector<2x128xf32>
    %307 = tpu.concatenate %305, %305, %305, %305 in 1 : vector<2x32xf32>, vector<2x32xf32>, vector<2x32xf32>, vector<2x32xf32> -> vector<2x128xf32>
    %308 = arith.mulf %306, %307 : vector<2x128xf32>
    %309 = arith.addf %302, %308 : vector<2x128xf32>
    %310 = arith.mulf %283, %287 : vector<2x4xf32>
    %311 = arith.mulf %310, %110 : vector<2x4xf32>
    %312 = vector.extract_strided_slice %248 {offsets = [0, 96], sizes = [2, 32], strides = [1, 1]} : vector<2x128xf32> to vector<2x32xf32>
    %cst_92 = arith.constant dense<0.000000e+00> : vector<2x128xf32>
    %313 = tpu.matmul %311, %27, %cst_92 {dimension_numbers = #tpu.dot_dimension_numbers<[1], [0], [0], [1], [0, 0, 1, 1], [], []>} : vector<2x4xf32>, vector<4x128xf32>, vector<2x128xf32> -> vector<2x128xf32>
    %314 = tpu.concatenate %312, %312, %312, %312 in 1 : vector<2x32xf32>, vector<2x32xf32>, vector<2x32xf32>, vector<2x32xf32> -> vector<2x128xf32>
    %315 = arith.mulf %313, %314 : vector<2x128xf32>
    %316 = arith.addf %309, %315 : vector<2x128xf32>
    %c1_93 = arith.constant 1 : index
    %c0_94 = arith.constant 0 : index
    %c0_95 = arith.constant 0 : index
    %317 = vector.load %arg12[%c1_93, %c0_94, %c0_95] : memref<2x128x128xf32, #tpu.memory_space<vmem>>, vector<1x128x128xf32>
    %318 = vector.shape_cast %317 : vector<1x128x128xf32> to vector<128x128xf32>
    %cst_96 = arith.constant dense<0.000000e+00> : vector<2x128xf32>
    %319 = tpu.matmul %316, %318, %cst_96 {dimension_numbers = #tpu.dot_dimension_numbers<[1], [0], [0], [1], [0, 0, 1, 1], [], []>} : vector<2x128xf32>, vector<128x128xf32>, vector<2x128xf32> -> vector<2x128xf32>
    %320 = arith.addf %239, %319 : vector<2x128xf32>
    %321 = arith.addf %320, %157 : vector<2x128xf32>
    %cst_97 = arith.constant dense<0.000000e+00> : vector<2x128xf32>
    %322 = tpu.matmul %110, %27, %cst_97 {dimension_numbers = #tpu.dot_dimension_numbers<[1], [0], [0], [1], [0, 0, 1, 1], [], []>} : vector<2x4xf32>, vector<4x128xf32>, vector<2x128xf32> -> vector<2x128xf32>
    %323 = arith.mulf %322, %321 : vector<2x128xf32>
    %cst_98 = arith.constant 1.000000e+00 : f32
    %324 = vector.broadcast %cst_98 : f32 to vector<2x128xf32>
    %325 = arith.subf %324, %322 : vector<2x128xf32>
    %326 = arith.mulf %325, %1 : vector<2x128xf32>
    %327 = arith.addf %323, %326 : vector<2x128xf32>
    %c0_99 = arith.constant 0 : index
    %c0_100 = arith.constant 0 : index
    %328 = vector.load %arg13[%c0_99, %c0_100] : memref<2x128xf32, #tpu.memory_space<vmem>>, vector<2x128xf32>
    tpu.vector_store %arg13[%c0_99, %c0_100], %327 {strides = array<i32>} : memref<2x128xf32, #tpu.memory_space<vmem>>, vector<2x128xf32>,
    return
  }
}

</mosaic_0001>

<bundles_post_ra>
// kernel: rim_cell_forward.1
= control target key start
LH: loop header
LB: loop body
LE: loop exit
PB: predicated region body
PF: predicated region fallthrough
CT: control target
= control target key end

     0   :  { %18 = vsyncpa [#allocation3], 0  ;;  %s3077_s0 = inlined_call_operand.vmem [shape: f32[2,16], index: 0, kind: input, shape index: {}]   ;;  %s3078_s1 = inlined_call_operand.vmem [shape: f32[2,128], index: 1, kind: input, shape index: {}]   ;;  %s3079_s2 = inlined_call_operand.vmem [shape: f32[16,16], index: 2, kind: input, shape index: {}]   ;;  %s3080_s3 = inlined_call_operand.vmem [shape: f32[1,16], index: 3, kind: input, shape index: {}]   ;;  %s3081_s4 = inlined_call_operand.vmem [shape: f32[16,32], index: 4, kind: input, shape index: {}]   ;;  %s3082_s5 = inlined_call_operand.vmem [shape: f32[1,32], index: 5, kind: input, shape index: {}]   ;;  %s3083_s6 = inlined_call_operand.vmem [shape: f32[128,64], index: 6, kind: input, shape index: {}]   ;;  %s3084_s7 = inlined_call_operand.vmem [shape: f32[128,384], index: 7, kind: input, shape index: {}]   ;;  %s3085_s8 = inlined_call_operand.hbm [shape: f32[128,384], index: 8, kind: input, shape index: {}]   ;;  %s3086_s9 = inlined_call_operand.vmem [shape: f32[2,128,64], index: 9, kind: input, shape index: {}]   ;;  %s3087_s10 = inlined_call_operand.vmem [shape: f32[2,128,64], index: 10, kind: input, shape index: {}]   ;;  %s3088_s11 = inlined_call_operand.vmem [shape: f32[2,128,128], index: 11, kind: input, shape index: {}]   ;;  %s3089_s12 = inlined_call_operand.hbm [shape: f32[2,128,128], index: 12, kind: input, shape index: {}]   ;;  %s3090_s13 = inlined_call_operand.vmem [shape: f32[2,128], index: 13, kind: output, shape index: {}]  }
   0x1   :  { %s40_s27 = sshll.u32 %s3085_s8, 4  ;;  %s41_s27 = int_to_ptr.hbm [resolvable:$true] %s40_s27 }
   0x2   :  { %19 = vsyncpa [#allocation5], 0  ;;  %s1907_s28 = smov [#allocation2]   ;;  %s59_s15 = sshll.u32 %s3089_s12, 4  ;;  %s60_s15 = int_to_ptr.hbm [resolvable:$true] %s59_s15 }
   0x3   :  { %s42_s29 = sshll.u32 %s1907_s28, 4  ;;  %s1908_s16 = smov 384   ;;  %s43_s29 = int_to_ptr.vmem [resolvable:$true] %s42_s29 }
   0x4   :  { %s1909_s17 = smov 24   ;;  %s1910_s18 = smov [#allocation4]  }
   0x5   :  { %48 = dma.hbm_to_vmem [thread:$0]  %s41_s27, 6144, %s43_s29, [#allocation3], %s1908_s16, %s1908_s16, %s1909_s17  }
   0x6   :  { %s61_s19 = sshll.u32 %s1910_s18, 4  ;;  %s1911_s20 = smov 128   ;;  %s62_s19 = int_to_ptr.vmem [resolvable:$true] %s61_s19 }
   0x7   :  { %s1912_s21 = smov 8  }
   0x8   :  { %67 = dma.hbm_to_vmem [thread:$0]  %s60_s15, 4096, %s62_s19, [#allocation5], %s1911_s20, %s1911_s20, %s1912_s21  }
   0x9   :  { %1903 = dma.done.wait [#allocation3], 6144  }
   0xa   :  { %1904 = vsyncadd [#allocation3], 4294961152 }
   0xb   :  { %1905 = dma.done.wait [#allocation5], 4096  }
   0xc   :  { %1906 = vsyncadd [#allocation5], 4294963200  ;;  %v141_v0 = vld [vmem:[%s3079_s2 + $0x8] sm:$0xff]  ;;  %v140_v1 = vld [vmem:[%s3079_s2] sm:$0xff]  ;;  %vm3092_vm0 = vcmask 130048   ;;  %s1913_s23 = smov 32   ;;  %v78_v23 = vlaneseq }
   0xd   :  { %164 = vmatpush.msra.mxu0 %v141_v0  ;;  %v76_v2 = vld [vmem:[%s3077_s0] sm:$0x3]  ;;  %v171_v3 = vld [vmem:[%s3081_s4 + $0x8] sm:$0xff]  ;;  %v211_v5 = vld [vmem:[%s3083_s6 + $0x78] sm:$0xff]  ;;  %s1914_s14 = smov 48   ;;  %v1915_v35 = vmov 1.0  }
   0xe   :  { %v170_v4 = vld [vmem:[%s3081_s4] sm:$0xff]  ;;  %190 = vmatpush.msra.mxu2 %v171_v3  ;;  %v210_v6 = vld [vmem:[%s3083_s6 + $0x70] sm:$0xff]  ;;  %v209_v7 = vld [vmem:[%s3083_s6 + $0x68] sm:$0xff]  ;;  %v2082_v24 = vshrl.u32 %v78_v23, 7  ;;  %v2084_v25 = vand.u32 127, %v78_v23  ;;  %v3114_v46 = vmov 0 }
   0xf   :  { %165 = vmatpush.msra.mxu0 %v140_v1  ;;  %v208_v8 = vld [vmem:[%s3083_s6 + $0x60] sm:$0xff]  ;;  %v207_v9 = vld [vmem:[%s3083_s6 + $0x58] sm:$0xff]  ;;  %v206_v11 = vld [vmem:[%s3083_s6 + $0x50] sm:$0xff]  ;;  %v1917_v1 = vmov 2   ;;  %v1919_v3 = vmov 0   ;;  %s1921_s28 = smov 64  }
  0x10   :  { %1623 = vmatmul.msk.f32.vlgmr.msra.gmra.mxu0 %vm3092_vm0, %v76_v2  ;;  %191 = vmatpush.msra.mxu2 %v170_v4  ;;  %v2037_v10 = vld [vmem:[%s3080_s3] ss:$0 sm:$0xff]  ;;  %v205_v12 = vld [vmem:[%s3083_s6 + $0x48] sm:$0xff]  ;;  %v203_v14 = vld [vmem:[%s3083_s6 + $0x38] sm:$0xff]  ;;  %v86_v26 = vadd.s32 56, %v2082_v24  ;;  %v89_v27 = vmul.u32 16, %v2084_v25 }
  0x11   :  { %1624 = vmatmul.msk.f32.vlgmr.msra.gmra.mxu2 %vm3092_vm0, %v76_v2  ;;  %276 = vrot.lane.b32.xlu2 %v2037_v10, %s1913_s23  ;;  %v204_v13 = vld [vmem:[%s3083_s6 + $0x40] sm:$0xff]  ;;  %v202_v15 = vld [vmem:[%s3083_s6 + $0x30] sm:$0xff]  ;;  %v201_v16 = vld [vmem:[%s3083_s6 + $0x28] sm:$0xff]  ;;  %v98_v28 = vadd.s32 1, %v2084_v25  ;;  %v85_v29 = vadd.s32 48, %v2082_v24  ;;  %v84_v30 = vadd.s32 40, %v2082_v24 }
  0x12   :  { %212 = vmatpush.msrb.mxu2 %v211_v5  ;;  %v200_v17 = vld [vmem:[%s3083_s6 + $0x20] sm:$0xff]  ;;  %v199_v18 = vld [vmem:[%s3083_s6 + $0x18] sm:$0xff]  ;;  %v198_v19 = vld [vmem:[%s3083_s6 + $0x10] sm:$0xff]  ;;  %vm97_vm1 = vcmp.ge.s32.totalorder %v86_v26, %v89_v27  ;;  %v83_v32 = vadd.s32 32, %v2082_v24  ;;  %v82_v33 = vadd.s32 24, %v2082_v24  ;;  %v81_v42 = vadd.s32 16, %v2082_v24  ;;  %1813 = vset.pattern.permute.xlu2 %v1917_v1 }
  0x13   :  { %v197_v20 = vld [vmem:[%s3083_s6 + $0x8] sm:$0xff]  ;;  %v196_v21 = vld [vmem:[%s3083_s6] sm:$0xff]  ;;  %v99_v31 = vmul.u32 16, %v98_v28  ;;  %vm96_vm2 = vcmp.ge.s32.totalorder %v85_v29, %v89_v27  ;;  %vm95_vm5 = vcmp.ge.s32.totalorder %v84_v30, %v89_v27  ;;  %s1916_s6 = smov 16   ;;  %v80_v43 = vadd.s32 8, %v2082_v24  ;;  %1811 = vset.pattern.permute.xlu0 %v1919_v3  ;;  %s1922_s29 = smov 96  }
  0x14   :  { %213 = vmatpush.msrb.mxu2 %v210_v6  ;;  %v2079_v22 = vld [vmem:[%s3078_s1] sm:$0x3]  ;;  %vm94_vm9 = vcmp.ge.s32.totalorder %v83_v32, %v89_v27  ;;  %vm93_vm12 = vcmp.ge.s32.totalorder %v82_v33, %v89_v27  ;;  %v1918_v2 = vmov 1   ;;  %v510_v23 = vld [vmem:[%s3084_s7 + $0x168] sm:$0xff]  ;;  %v600_v1 = vld [vmem:[#allocation2 + $0xd8] sm:$0xff]  ;;  %s1925_s25 = smov 80  }
  0x15   :  { %vm107_vm3 = vcmp.lt.s32.totalorder %v86_v26, %v99_v31  ;;  %vm106_vm4 = vcmp.lt.s32.totalorder %v85_v29, %v99_v31  ;;  %vm105_vm6 = vcmp.lt.s32.totalorder %v84_v30, %v99_v31  ;;  %vm104_vm10 = vcmp.lt.s32.totalorder %v83_v32, %v99_v31  ;;  %v142_v51 = vld [vmem:[%s3080_s3] sm:$0x1]  ;;  %1812 = vset.pattern.permute.xlu1 %v1918_v2  ;;  %v504_v26 = vld [vmem:[%s3084_s7 + $0x138] sm:$0xff]  ;;  %v618_v32 = vld [vmem:[#allocation2 + $0x168] sm:$0xff] }
  0x16   :  { %214 = vmatpush.msrb.mxu2 %v209_v7  ;;  %vm2093_vm7 = vmand %vm97_vm1, %vm107_vm3  ;;  %vm103_vm13 = vcmp.lt.s32.totalorder %v82_v33, %v99_v31  ;;  %vm92_vm1 = vcmp.ge.s32.totalorder %v81_v42, %v89_v27  ;;  %v1817_v6 = vld [vmem:[%s3082_s5] ss:$0 sm:$0xff]  ;;  %v1920_v7 = vmov 3   ;;  %v483_v3 = vld [vmem:[%s3084_s7 + $0x90] sm:$0xff] }
  0x17   :  { %1625 = vmatpush.msk.msra.mxu3 %vm2093_vm7, %v1915_v35  ;;  %vm2100_vm8 = vmand %vm96_vm2, %vm106_vm4  ;;  %vm102_vm2 = vcmp.lt.s32.totalorder %v81_v42, %v99_v31  ;;  %vm91_vm4 = vcmp.ge.s32.totalorder %v80_v43, %v89_v27  ;;  %v501_v30 = vld [vmem:[%s3084_s7 + $0x120] sm:$0xff]  ;;  %v498_v42 = vld [vmem:[%s3084_s7 + $0x108] sm:$0xff] }
  0x18   :  { %215 = vmatpush.msrb.mxu2 %v208_v8  ;;  %vm2104_vm11 = vmand %vm95_vm5, %vm105_vm6  ;;  %vm101_vm5 = vcmp.lt.s32.totalorder %v80_v43, %v99_v31  ;;  %vm90_vm6 = vcmp.ge.s32.totalorder %v2082_v24, %v89_v27  ;;  %v615_v43 = vld [vmem:[#allocation2 + $0x150] sm:$0xff]  ;;  %v497_v33 = vld [vmem:[%s3084_s7 + $0x100] sm:$0xff] }
  0x19   :  { %279 = vrot.lane.b32.xlu2 %v2037_v10, %s1914_s14  ;;  %1626 = vmatpush.msk.msra.mxu3 %vm2100_vm8, %v1915_v35  ;;  %vm2111_vm14 = vmand %vm94_vm9, %vm104_vm10  ;;  %vm100_vm9 = vcmp.lt.s32.totalorder %v2082_v24, %v99_v31  ;;  %v511_v31 = vld [vmem:[%s3084_s7 + $0x170] sm:$0xff]  ;;  %v1130_v44 = vld [vmem:[#allocation4 + $0x78] sm:$0xff] }
  0x1a   :  { %216 = vmatpush.msrb.mxu2 %v207_v9  ;;  %vm2118_vm15 = vmand %vm93_vm12, %vm103_vm13  ;;  %vm3095_vm13 = vcmask 261120   ;;  %v134_v9 = vadd.s32 1, %v2082_v24  ;;  %533 = vmatpush.msrb.mxu0 %v511_v31  ;;  %v1129_v45 = vld [vmem:[#allocation4 + $0x70] sm:$0xff] }
  0x1b   :  { %1627 = vmatpush.msk.msra.mxu3 %vm2104_vm11, %v1915_v35  ;;  %vm2136_vm3 = vmand %vm92_vm1, %vm102_vm2  ;;  %vm3091_vm1 = vcmask 392192   ;;  %vm3094_vm2 = vcmask 523264  }
  0x1c   :  { %217 = vmatpush.msrb.mxu2 %v206_v11  ;;  %vm2145_vm10 = vmand %vm91_vm4, %vm101_vm5  ;;  %v132_v11 = vmul.u32 32, %v2082_v24  ;;  %v507_v24 = vld [vmem:[%s3084_s7 + $0x150] sm:$0xff] }
  0x1d   :  { %1628 = vmatpush.msk.msra.mxu3 %vm2111_vm14, %v1915_v35  ;;  %vm2152_vm12 = vmand %vm90_vm6, %vm100_vm9  ;;  %vm3093_vm9 = vcmask 1043456  }
  0x1e   :  { %218 = vmatpush.msrb.mxu2 %v205_v12  ;;  %v3115_v46 = vsel %vm2152_vm12, 4294967295, %v3114_v46  ;;  %v135_v12 = vmul.u32 32, %v134_v9  ;;  %vm133_vm4 = vcmp.ge.s32.totalorder %v2084_v25, %v132_v11  ;;  %v487_v11 = vld [vmem:[%s3084_s7 + $0xb0] sm:$0xff] }
  0x1f   :  { %1629 = vmatpush.msk.msra.mxu3 %vm2118_vm15, %v1915_v35 }
  0x20   :  { %219 = vmatpush.msrb.mxu2 %v204_v13  ;;  %vm136_vm5 = vcmp.lt.s32.totalorder %v2084_v25, %v135_v12  ;;  %v594_v12 = vld [vmem:[#allocation2 + $0xa8] sm:$0xff] }
  0x21   :  { %1630 = vmatpush.msk.msra.mxu3 %vm2136_vm3, %v1915_v35  ;;  %vm137_vm6 = vmand %vm133_vm4, %vm136_vm5  ;;  %vm346_vm4 = vcmp.gt.s32.totalorder %v2084_v25, 2 }
  0x22   :  { %220 = vmatpush.msrb.mxu2 %v203_v14 }
  0x23   :  { %1631 = vmatpush.msk.msra.mxu3 %vm2145_vm10, %v1915_v35 }
  0x24   :  { %221 = vmatpush.msrb.mxu2 %v202_v15  ;;  %v1923_v15 = vmov 0.0  }
  0x25   :  { %1632 = vmatpush.msk.msra.mxu3 %vm2152_vm12, %v1915_v35 }
  0x26   :  { %222 = vmatpush.msrb.mxu2 %v201_v16  ;;  %v2220_v16 = vsel %vm137_vm6, 1.0, %v1923_v15  ;;  %vm332_vm6 = vcmp.gt.s32.totalorder %v2084_v25, 1 }
  0x27   :  { %1634 = vmatpush.msk.msrb.mxu3 %vm2093_vm7, %v1915_v35  ;;  %1648 = vmatpush.msk.msra.mxu1 %vm3093_vm9, %v2220_v16 }
  0x28   :  { %223 = vmatpush.msrb.mxu2 %v200_v17 }
  0x29   :  { %1635 = vmatpush.msk.msrb.mxu3 %vm2100_vm8, %v1915_v35  ;;  %1650 = vmatpush.msk.msrb.mxu1 %vm3093_vm9, %v2220_v16 }
  0x2a   :  { %224 = vmatpush.msrb.mxu2 %v199_v18 }
  0x2b   :  { %1636 = vmatpush.msk.msrb.mxu3 %vm2104_vm11, %v1915_v35 }
  0x2c   :  { %225 = vmatpush.msrb.mxu2 %v198_v19 }
  0x2d   :  { %1637 = vmatpush.msk.msrb.mxu3 %vm2111_vm14, %v1915_v35 }
  0x2e   :  { %226 = vmatpush.msrb.mxu2 %v197_v20 }
  0x2f   :  { %1638 = vmatpush.msk.msrb.mxu3 %vm2118_vm15, %v1915_v35 }
  0x30   :  { %227 = vmatpush.msrb.mxu2 %v196_v21 }
  0x31   :  { %228 = vmatmul.f32.vlgmr.msrb.gmra.mxu2 %v2079_v22  ;;  %1639 = vmatpush.msk.msrb.mxu3 %vm2136_vm3, %v1915_v35 }
  0x32   :  { %621 = vmatpush.msra.mxu2 %v618_v32  ;;  %v500_v32 = vld [vmem:[%s3084_s7 + $0x118] sm:$0xff] }
  0x33   :  { %1640 = vmatpush.msk.msrb.mxu3 %vm2145_vm10, %v1915_v35 }
  0x34   :  { %622 = vmatpush.msra.mxu2 %v615_v43  ;;  %v491_v43 = vld [vmem:[%s3084_s7 + $0xd0] sm:$0xff] }
  0x35   :  { %1641 = vmatpush.msk.msrb.mxu3 %vm2152_vm12, %v1915_v35 }
  0x6b   :  { %v277_v48 = vpop.permute.xlu2 %276 }
  0x73   :  { %v280_v58 = vpop.permute.xlu2 %279 }
  0x8d   :  { %v167_v40 = vpop.f32.mrf.mxu0 }
  0x8e   :  { %v168_v41 = vadd.f32 %v2037_v10, %v167_v40 }
  0x90   :  { %239 = vrot.lane.b32.xlu1 %v168_v41, %s1914_s14  ;;  %233 = vrot.lane.b32.xlu0 %v168_v41, %s1916_s6 }
  0x94   :  { %v193_v47 = vpop.f32.mrf.mxu2 }
  0x95   :  { %v2205_v8 = vadd.f32 %v1817_v6, %v193_v47 }
  0x98   :  { %273 = vrot.lane.b32.xlu1 %v2037_v10, %s1916_s6  ;;  %236 = vrot.lane.b32.xlu0 %v168_v41, %s1913_s23 }
  0xb4   :  { %v229_v52 = vpop.f32.mrf.mxu2 }
 0x102   :  { %v240_v49 = vpop.permute.xlu1 %239  ;;  %v234_v50 = vpop.permute.xlu0 %233 }
 0x103   :  { %v242_v53 = vsel %vm3092_vm0, %v168_v41, %v234_v50  ;;  %v508_v41 = vld [vmem:[%s3084_s7 + $0x158] sm:$0xff] }
 0x104   :  { %534 = vmatpush.msrb.mxu0 %v508_v41  ;;  %v612_v50 = vld [vmem:[#allocation2 + $0x138] sm:$0xff]  ;;  %v494_v41 = vld [vmem:[%s3084_s7 + $0xe8] sm:$0xff] }
 0x105   :  { %623 = vmatpush.msra.mxu2 %v612_v50  ;;  %v485_v50 = vld [vmem:[%s3084_s7 + $0xa0] sm:$0xff] }
 0x10a   :  { %v274_v54 = vpop.permute.xlu1 %273  ;;  %v237_v55 = vpop.permute.xlu0 %236 }
 0x10b   :  { %v282_v56 = vsel %vm3092_vm0, %v142_v51, %v274_v54  ;;  %v244_v57 = vsel %vm3095_vm13, %v242_v53, %v237_v55  ;;  %v492_v54 = vld [vmem:[%s3084_s7 + $0xd8] sm:$0xff]  ;;  %v609_v55 = vld [vmem:[#allocation2 + $0x120] sm:$0xff] }
 0x10c   :  { %v283_v59 = vsel %vm3095_vm13, %v282_v56, %v277_v48  ;;  %v246_v60 = vsel %vm3091_vm1, %v244_v57, %v240_v49  ;;  %v505_v48 = vld [vmem:[%s3084_s7 + $0x140] sm:$0xff]  ;;  %v495_v49 = vld [vmem:[%s3084_s7 + $0xf0] sm:$0xff]  ;;  %v606_v57 = vld [vmem:[#allocation2 + $0x108] sm:$0xff]  ;;  %624 = vmatpush.msra.mxu2 %v609_v55 }
 0x10d   :  { %v247_v61 = vmul.f32 %v246_v60, %v229_v52  ;;  %v284_v62 = vsel %vm3091_vm1, %v283_v59, %v280_v58  ;;  %535 = vmatpush.msrb.mxu0 %v505_v48  ;;  %v499_v56 = vld [vmem:[%s3084_s7 + $0x110] sm:$0xff]  ;;  %v489_v59 = vld [vmem:[%s3084_s7 + $0xc0] sm:$0xff]  ;;  %v496_v60 = vld [vmem:[%s3084_s7 + $0xf8] sm:$0xff] }
 0x10e   :  { %v285_v63 = vperm.slane %v284_v62, 0  ;;  %v603_v62 = vld [vmem:[#allocation2 + $0xf0] sm:$0xff]  ;;  %625 = vmatpush.msra.mxu2 %v606_v57  ;;  %v488_v48 = vld [vmem:[%s3084_s7 + $0xb8] sm:$0xff]  ;;  %v478_v57 = vld [vmem:[%s3084_s7 + $0x68] sm:$0xff] }
 0x10f   :  { %1633 = vmatmul.msk.f32.vlgmr.msra.gmra.mxu3 %vm3094_vm2, %v247_v61  ;;  %v588_v55 = vld [vmem:[#allocation2 + $0x78] sm:$0xff] }
 0x110   :  { %v286_v0 = vmul.f32 %v285_v63, %v229_v52  ;;  %513 = vmatpush.msra.mxu3 %v510_v23  ;;  %v502_v52 = vld [vmem:[%s3084_s7 + $0x128] sm:$0xff]  ;;  %v493_v63 = vld [vmem:[%s3084_s7 + $0xe0] sm:$0xff]  ;;  %626 = vmatpush.msra.mxu2 %v603_v62  ;;  %v476_v62 = vld [vmem:[%s3084_s7 + $0x58] sm:$0xff] }
 0x111   :  { %536 = vmatpush.msrb.mxu0 %v502_v52  ;;  %v506_v23 = vld [vmem:[%s3084_s7 + $0x148] sm:$0xff]  ;;  %v604_v52 = vld [vmem:[#allocation2 + $0xf8] sm:$0xff] }
 0x112   :  { %514 = vmatpush.msra.mxu3 %v507_v24  ;;  %627 = vmatpush.msra.mxu2 %v600_v1  ;;  %v468_v24 = vld [vmem:[%s3084_s7 + $0x18] sm:$0xff]  ;;  %v473_v1 = vld [vmem:[%s3084_s7 + $0x40] sm:$0xff] }
 0x113   :  { %537 = vmatpush.msrb.mxu0 %v499_v56  ;;  %v601_v56 = vld [vmem:[#allocation2 + $0xe0] sm:$0xff] }
 0x114   :  { %515 = vmatpush.msra.mxu3 %v504_v26 }
 0x115   :  { %538 = vmatpush.msrb.mxu0 %v496_v60  ;;  %v598_v60 = vld [vmem:[#allocation2 + $0xc8] sm:$0xff] }
 0x116   :  { %516 = vmatpush.msra.mxu3 %v501_v30  ;;  %v619_v30 = vld [vmem:[#allocation2 + $0x170] sm:$0xff] }
 0x117   :  { %1642 = vmatmul.msk.f32.vlgmr.msrb.gmra.mxu3 %vm3094_vm2, %v286_v0  ;;  %539 = vmatpush.msrb.mxu0 %v493_v63  ;;  %v595_v63 = vld [vmem:[#allocation2 + $0xb0] sm:$0xff] }
 0x118   :  { %517 = vmatpush.msra.mxu3 %v498_v42  ;;  %v610_v42 = vld [vmem:[#allocation2 + $0x128] sm:$0xff] }
 0x11a   :  { %518 = vmatpush.msra.mxu3 %v495_v49  ;;  %v484_v49 = vld [vmem:[%s3084_s7 + $0x98] sm:$0xff] }
 0x11c   :  { %519 = vmatpush.msra.mxu3 %v492_v54  ;;  %v482_v54 = vld [vmem:[%s3084_s7 + $0x88] sm:$0xff] }
 0x11e   :  { %520 = vmatpush.msra.mxu3 %v489_v59  ;;  %v585_v59 = vld [vmem:[#allocation2 + $0x60] sm:$0xff] }
 0x192   :  { %v269_v4 = vpop.f32.mrf.mxu3 }
 0x193   :  { %v2194_v5 = vmul.f32 0.25, %v269_v4  ;;  %v490_v4 = vld [vmem:[%s3084_s7 + $0xc8] sm:$0xff] }
 0x194   :  { %540 = vmatpush.msrb.mxu0 %v490_v4  ;;  %v469_v4 = vld [vmem:[%s3084_s7 + $0x20] sm:$0xff] }
 0x195   :  { %341 = vperm.xlu2 %1813, %v2194_v5   ;;  %327 = vperm.xlu1 %1812, %v2194_v5  }
 0x196   :  { %313 = vperm.xlu0 %1811, %v2194_v5   ;;  %541 = vmatpush.msrb.mxu0 %v487_v11  ;;  %v573_v11 = vld [vmem:[#allocation2] sm:$0xff] }
 0x198   :  { %542 = vmatpush.msrb.mxu0 %v484_v49 }
 0x19a   :  { %v307_v10 = vpop.f32.mrf.mxu3 }
 0x19b   :  { %v310_v13 = vmul.f32 0.25, %v307_v10  ;;  %v480_v10 = vld [vmem:[%s3084_s7 + $0x78] sm:$0xff] }
 0x19d   :  { %1814 = vset.pattern.permute.xlu1 %v1920_v7  ;;  %450 = vrot.lane.b32.xlu2 %v1817_v6, %s1913_s23  ;;  %v371_v14 = vmax.f32 %v2194_v5, %v310_v13 }
 0x19e   :  { %453 = vrot.lane.b32.xlu0 %v1817_v6, %s1921_s28  ;;  %355 = vperm.xlu1 %1814, %v2194_v5  }
 0x19f   :  { %1815 = vset.pattern.permute.xlu0 %v1920_v7  ;;  %v372_v17 = vsub.f32 %v2194_v5, %v371_v14  ;;  %v375_v18 = vsub.f32 %v310_v13, %v371_v14  ;;  %v597_v7 = vld [vmem:[#allocation2 + $0xc0] sm:$0xff] }
 0x1a0   :  { %v477_v14 = vld [vmem:[%s3084_s7 + $0x60] sm:$0xff]  ;;  %628 = vmatpush.msra.mxu2 %v597_v7 }
 0x1a1   :  { %v373_v19 = vmul.f32 1.442695, %v372_v17  ;;  %v376_v20 = vmul.f32 1.442695, %v375_v18  ;;  %v589_v7 = vld [vmem:[#allocation2 + $0x80] sm:$0xff] }
 0x1a2   :  { %629 = vmatpush.msra.mxu2 %v594_v12  ;;  %v586_v12 = vld [vmem:[#allocation2 + $0x68] sm:$0xff] }
 0x1a3   :  { %1818 = vpow2.f32 %v373_v19  ;;  %v512_v19 = vld [vmem:[%s3084_s7 + $0x178] sm:$0xff] }
 0x1a4   :  { %1820 = vpow2.f32 %v376_v20  ;;  %v474_v20 = vld [vmem:[%s3084_s7 + $0x48] sm:$0xff] }
 0x1a5   :  { %456 = vrot.lane.b32.xlu2 %v1817_v6, %s1922_s29 }
 0x1a6   :  { %416 = vrot.lane.b32.xlu0 %v2205_v8, %s1921_s28  ;;  %413 = vrot.lane.b32.xlu1 %v2205_v8, %s1913_s23 }
 0x1a9   :  { %v2238_v27 = vpop.eup %1818 }
 0x1aa   :  { %v2241_v28 = vpop.eup %1820 }
 0x1ab   :  { %v378_v47 = vadd.f32 %v2241_v28, %v2238_v27 }
 0x1ad   :  { %1822 = vrcp.f32 %v378_v47  ;;  %v607_v47 = vld [vmem:[#allocation2 + $0x110] sm:$0xff] }
 0x1ae   :  { %419 = vrot.lane.b32.xlu1 %v2205_v8, %s1922_s29 }
 0x1ef   :  { %v342_v21 = vpop.permute.xlu2 %341 }
 0x1f0   :  { %vm345_vm5 = vcmp.eq.f32.partialorder %v342_v21, %v2194_v5 }
 0x1f1   :  { %vm2249_vm1 = vmand %vm345_vm5, %vm346_vm4  ;;  %vm344_vm4 = vcmp.gt.f32.partialorder %v342_v21, %v2194_v5  ;;  %v471_v21 = vld [vmem:[%s3084_s7 + $0x30] sm:$0xff] }
 0x207   :  { %v328_v29 = vpop.permute.xlu1 %327 }
 0x208   :  { %vm330_vm0 = vcmp.gt.f32.partialorder %v328_v29, %v2194_v5  ;;  %vm331_vm9 = vcmp.eq.f32.partialorder %v328_v29, %v2194_v5  ;;  %v314_v40 = vpop.permute.xlu0 %313  ;;  %v465_v29 = vld [vmem:[%s3084_s7] sm:$0xff] }
 0x209   :  { %vm335_vm13 = vmand %vm331_vm9, %vm332_vm6  ;;  %vm317_vm5 = vcmp.eq.f32.partialorder %v314_v40, %v2194_v5  ;;  %vm3118_vm9 = vcmp.gt.s32.totalorder %v2084_v25, 0 }
 0x20a   :  { %vm336_vm2 = vmor %vm330_vm0, %vm335_vm13  ;;  %vm3119_vm0 = vcmp.gt.f32.partialorder %v314_v40, %v2194_v5  ;;  %v613_v40 = vld [vmem:[#allocation2 + $0x140] sm:$0xff] }
 0x20b   :  { %vm321_vm6 = vmand %vm317_vm5, %vm3118_vm9  ;;  %v1644_v51 = vsel %vm336_vm2, 1.0, %v1923_v15  ;;  %vm360_vm5 = vcmp.gt.s32.totalorder %v2084_v25, 3  ;;  %v486_v25 = vld [vmem:[%s3084_s7 + $0xa8] sm:$0xff] }
 0x20c   :  { %vm322_vm13 = vmor %vm3119_vm0, %vm321_vm6  ;;  %521 = vmatpush.msra.mxu3 %v486_v25  ;;  %v582_v25 = vld [vmem:[#allocation2 + $0x48] sm:$0xff] }
 0x20d   :  { %v1643_v53 = vsel %vm322_vm13, 1.0, %v1923_v15  ;;  %vm350_vm2 = vmor %vm344_vm4, %vm2249_vm1  ;;  %vm3097_vm13 = vcmask 31744  }
 0x20e   :  { %v339_v58 = vadd.f32 %v1644_v51, %v1643_v53  ;;  %v1645_v0 = vsel %vm350_vm2, 1.0, %v1923_v15  ;;  %522 = vmatpush.msra.mxu3 %v483_v3  ;;  %v591_v51 = vld [vmem:[#allocation2 + $0x90] sm:$0xff]  ;;  %v481_v53 = vld [vmem:[%s3084_s7 + $0x80] sm:$0xff]  ;;  %v592_v3 = vld [vmem:[#allocation2 + $0x98] sm:$0xff]  ;;  %vm3120_vm2 = vcmask 261120  }
 0x20f   :  { %630 = vmatpush.msra.mxu2 %v591_v51  ;;  %543 = vmatpush.msrb.mxu0 %v481_v53 }
 0x210   :  { %v356_v61 = vpop.permute.xlu1 %355  ;;  %v353_v2 = vadd.f32 %v1645_v0, %v339_v58  ;;  %523 = vmatpush.msra.mxu3 %v480_v10  ;;  %v479_v58 = vld [vmem:[%s3084_s7 + $0x70] sm:$0xff]  ;;  %v472_v0 = vld [vmem:[%s3084_s7 + $0x38] sm:$0xff] }
 0x211   :  { %vm358_vm9 = vcmp.gt.f32.partialorder %v356_v61, %v2194_v5  ;;  %vm359_vm1 = vcmp.eq.f32.partialorder %v356_v61, %v2194_v5  ;;  %v1823_v5 = vpop.eup %1822  ;;  %631 = vmatpush.msra.mxu2 %v588_v55  ;;  %v475_v61 = vld [vmem:[%s3084_s7 + $0x50] sm:$0xff]  ;;  %544 = vmatpush.msrb.mxu0 %v478_v57 }
 0x212   :  { %vm363_vm4 = vmand %vm359_vm1, %vm360_vm5  ;;  %v380_v13 = vmul.f32 %v1823_v5, %v2238_v27  ;;  %524 = vmatpush.msra.mxu3 %v477_v14  ;;  %v382_v26 = vmul.f32 %v1823_v5, %v2241_v28  ;;  %v503_v27 = vld [vmem:[%s3084_s7 + $0x130] sm:$0xff]  ;;  %v616_v28 = vld [vmem:[#allocation2 + $0x158] sm:$0xff]  ;;  %vm3121_vm5 = vcmask 523264  }
 0x213   :  { %vm364_vm6 = vmor %vm358_vm9, %vm363_vm4  ;;  %632 = vmatpush.msra.mxu2 %v585_v59  ;;  %545 = vmatpush.msrb.mxu0 %v475_v61  ;;  %v470_v5 = vld [vmem:[%s3084_s7 + $0x28] sm:$0xff]  ;;  %v467_v10 = vld [vmem:[%s3084_s7 + $0x10] sm:$0xff]  ;;  %vm3096_vm9 = vcmask 785408  }
 0x214   :  { %v1646_v6 = vsel %vm364_vm6, 1.0, %v1923_v15  ;;  %525 = vmatpush.msra.mxu3 %v474_v20  ;;  %v620_v14 = vld [vmem:[#allocation2 + $0x178] sm:$0xff]  ;;  %v577_v20 = vld [vmem:[#allocation2 + $0x20] sm:$0xff]  ;;  %vm3122_vm1 = vmmov %vm3120_vm2  ;;  %vm3124_vm6 = vcmask 1043456  }
 0x215   :  { %v367_v9 = vadd.f32 %v1646_v6, %v353_v2  ;;  %633 = vmatpush.msra.mxu2 %v582_v25  ;;  %v579_v2 = vld [vmem:[#allocation2 + $0x30] sm:$0xff]  ;;  %546 = vmatpush.msrb.mxu0 %v472_v0  ;;  %v576_v6 = vld [vmem:[#allocation2 + $0x18] sm:$0xff]  ;;  %vm3123_vm4 = vmmov %vm3121_vm5 }
 0x216   :  { %526 = vmatpush.msra.mxu3 %v471_v21  ;;  %v614_v21 = vld [vmem:[#allocation2 + $0x148] sm:$0xff]  ;;  %v581_v61 = vld [vmem:[#allocation2 + $0x40] sm:$0xff]  ;;  %v575_v25 = vld [vmem:[#allocation2 + $0x10] sm:$0xff] }
 0x217   :  { %vm368_vm0 = vcmp.lt.f32.partialorder %v367_v9, 2.0  ;;  %634 = vmatpush.msra.mxu2 %v579_v2  ;;  %547 = vmatpush.msrb.mxu0 %v469_v4  ;;  %v466_v9 = vld [vmem:[%s3084_s7 + $0x8] sm:$0xff]  ;;  %v814_v0 = vld [vmem:[%s3088_s11 + $0x78] sm:$0xff]  ;;  %v777_v2 = vld [vmem:[%s3087_s10 + $0x70] sm:$0xff] }
 0x218   :  { %v2328_v17 = vsel %vm368_vm0, 1.0, %v1923_v15  ;;  %v509_v15 = vld [vmem:[%s3084_s7 + $0x160] sm:$0xff]  ;;  %527 = vmatpush.msra.mxu3 %v468_v24  ;;  %v451_v24 = vpop.permute.xlu2 %450  ;;  %v740_v4 = vld [vmem:[%s3086_s9 + $0x68] sm:$0xff] }
 0x219   :  { %v381_v18 = vmul.f32 %v2328_v17, %v380_v13  ;;  %v383_v31 = vmul.f32 %v2328_v17, %v382_v26  ;;  %635 = vmatpush.msra.mxu2 %v576_v6  ;;  %548 = vmatpush.msrb.mxu0 %v466_v9  ;;  %v583_v13 = vld [vmem:[#allocation2 + $0x50] sm:$0xff]  ;;  %v608_v26 = vld [vmem:[#allocation2 + $0x118] sm:$0xff]  ;;  %v812_v6 = vld [vmem:[%s3088_s11 + $0x68] sm:$0xff] }
 0x21a   :  { %528 = vmatpush.msra.mxu3 %v465_v29  ;;  %v172_v29 = vld [vmem:[%s3082_s5] sm:$0x1] }
 0x21b   :  { %1649 = vmatmul.msk.f32.vlgmr.msra.gmra.mxu1 %vm3097_vm13, %v381_v18  ;;  %636 = vmatpush.msra.mxu2 %v573_v11  ;;  %v617_v18 = vld [vmem:[#allocation2 + $0x160] sm:$0xff]  ;;  %v738_v11 = vld [vmem:[%s3086_s9 + $0x58] sm:$0xff] }
 0x21c   :  { %553 = vmatpush.msra.mxu1 %v512_v19  ;;  %641 = vmatpush.msrb.mxu3 %v619_v30  ;;  %v580_v19 = vld [vmem:[#allocation2 + $0x38] sm:$0xff]  ;;  %v414_v30 = vpop.permute.xlu1 %413  ;;  %v775_v9 = vld [vmem:[%s3087_s10 + $0x60] sm:$0xff] }
 0x21d   :  { %637 = vmatmul.f32.vlgmr.msra.gmra.mxu2 %v2079_v22  ;;  %661 = vmatpush.msra.mxu0 %v620_v14  ;;  %v422_v49 = vsel %vm3122_vm1, %v2205_v8, %v414_v30  ;;  %v737_v14 = vld [vmem:[%s3086_s9 + $0x50] sm:$0xff] }
 0x21e   :  { %554 = vmatpush.msra.mxu1 %v509_v15  ;;  %642 = vmatpush.msrb.mxu3 %v616_v28  ;;  %v574_v15 = vld [vmem:[#allocation2 + $0x8] sm:$0xff]  ;;  %v599_v28 = vld [vmem:[#allocation2 + $0xd0] sm:$0xff] }
 0x21f   :  { %662 = vmatpush.msra.mxu0 %v617_v18  ;;  %v773_v18 = vld [vmem:[%s3087_s10 + $0x50] sm:$0xff] }
 0x220   :  { %555 = vmatpush.msra.mxu1 %v506_v23  ;;  %643 = vmatpush.msrb.mxu3 %v613_v40  ;;  %v611_v23 = vld [vmem:[#allocation2 + $0x130] sm:$0xff]  ;;  %v596_v40 = vld [vmem:[#allocation2 + $0xb8] sm:$0xff] }
 0x221   :  { %663 = vmatpush.msra.mxu0 %v614_v21  ;;  %v772_v21 = vld [vmem:[%s3087_s10 + $0x48] sm:$0xff] }
 0x222   :  { %556 = vmatpush.msra.mxu1 %v503_v27  ;;  %644 = vmatpush.msrb.mxu3 %v610_v42  ;;  %v605_v27 = vld [vmem:[#allocation2 + $0x100] sm:$0xff]  ;;  %v457_v42 = vpop.permute.xlu2 %456 }
 0x223   :  { %1651 = vmatmul.msk.f32.vlgmr.msrb.gmra.mxu1 %vm3097_vm13, %v383_v31  ;;  %664 = vmatpush.msra.mxu0 %v611_v23  ;;  %v602_v31 = vld [vmem:[#allocation2 + $0xe8] sm:$0xff] }
 0x224   :  { %557 = vmatpush.msra.mxu1 %v500_v32  ;;  %645 = vmatpush.msrb.mxu3 %v607_v47  ;;  %v454_v32 = vpop.permute.xlu0 %453  ;;  %v593_v47 = vld [vmem:[#allocation2 + $0xa0] sm:$0xff]  ;;  %v420_v51 = vpop.permute.xlu1 %419  ;;  %v808_v23 = vld [vmem:[%s3088_s11 + $0x48] sm:$0xff] }
 0x225   :  { %665 = vmatpush.msra.mxu0 %v608_v26  ;;  %v735_v26 = vld [vmem:[%s3086_s9 + $0x40] sm:$0xff] }
 0x226   :  { %558 = vmatpush.msra.mxu1 %v497_v33  ;;  %646 = vmatpush.msrb.mxu3 %v604_v52  ;;  %v459_v33 = vsel %vm3120_vm2, %v172_v29, %v451_v24  ;;  %v587_v52 = vld [vmem:[#allocation2 + $0x70] sm:$0xff]  ;;  %v807_v29 = vld [vmem:[%s3088_s11 + $0x40] sm:$0xff] }
 0x227   :  { %666 = vmatpush.msra.mxu0 %v605_v27  ;;  %v771_v27 = vld [vmem:[%s3087_s10 + $0x40] sm:$0xff] }
 0x228   :  { %559 = vmatpush.msra.mxu1 %v494_v41  ;;  %647 = vmatpush.msrb.mxu3 %v601_v56  ;;  %v584_v56 = vld [vmem:[#allocation2 + $0x58] sm:$0xff] }
 0x229   :  { %667 = vmatpush.msra.mxu0 %v602_v31  ;;  %v734_v31 = vld [vmem:[%s3086_s9 + $0x38] sm:$0xff] }
 0x22a   :  { %560 = vmatpush.msra.mxu1 %v491_v43  ;;  %648 = vmatpush.msrb.mxu3 %v598_v60  ;;  %v460_v43 = vsel %vm3121_vm5, %v459_v33, %v454_v32  ;;  %v770_v32 = vld [vmem:[%s3087_s10 + $0x38] sm:$0xff] }
 0x22b   :  { %668 = vmatpush.msra.mxu0 %v599_v28  ;;  %v806_v28 = vld [vmem:[%s3088_s11 + $0x38] sm:$0xff] }
 0x22c   :  { %561 = vmatpush.msra.mxu1 %v488_v48  ;;  %649 = vmatpush.msrb.mxu3 %v595_v63  ;;  %v590_v48 = vld [vmem:[#allocation2 + $0x88] sm:$0xff]  ;;  %v417_v53 = vpop.permute.xlu0 %416  ;;  %v778_v63 = vld [vmem:[%s3087_s10 + $0x78] sm:$0xff] }
 0x22d   :  { %669 = vmatpush.msra.mxu0 %v596_v40  ;;  %v423_v55 = vsel %vm3123_vm4, %v422_v49, %v417_v53  ;;  %779 = vmatpush.msrb.mxu2 %v778_v63  ;;  %v733_v40 = vld [vmem:[%s3086_s9 + $0x30] sm:$0xff]  ;;  %v803_v53 = vld [vmem:[%s3088_s11 + $0x20] sm:$0xff]  ;;  %v800_v63 = vld [vmem:[%s3088_s11 + $0x8] sm:$0xff] }
 0x22e   :  { %562 = vmatpush.msra.mxu1 %v485_v50  ;;  %650 = vmatpush.msrb.mxu3 %v592_v3  ;;  %v461_v50 = vsel %vm3096_vm9, %v460_v43, %v457_v42  ;;  %v425_v57 = vsel %vm3096_vm9, %v423_v55, %v420_v51  ;;  %v813_v3 = vld [vmem:[%s3088_s11 + $0x70] sm:$0xff]  ;;  %v732_v43 = vld [vmem:[%s3086_s9 + $0x28] sm:$0xff]  ;;  %v731_v51 = vld [vmem:[%s3086_s9 + $0x20] sm:$0xff]  ;;  %vm3133_vm9 = vcmask 523264  }
 0x22f   :  { %670 = vmatpush.msra.mxu0 %v593_v47  ;;  %780 = vmatpush.msrb.mxu2 %v777_v2  ;;  %v805_v42 = vld [vmem:[%s3088_s11 + $0x30] sm:$0xff]  ;;  %v768_v47 = vld [vmem:[%s3087_s10 + $0x28] sm:$0xff]  ;;  %v730_v55 = vld [vmem:[%s3086_s9 + $0x18] sm:$0xff] }
 0x230   :  { %563 = vmatpush.msra.mxu1 %v482_v54  ;;  %651 = vmatpush.msrb.mxu3 %v589_v7  ;;  %v462_v54 = vperm.slane %v461_v50, 0  ;;  %v739_v7 = vld [vmem:[%s3086_s9 + $0x60] sm:$0xff]  ;;  %vm3134_vm13 = vmmov %vm3133_vm9 }
 0x231   :  { %671 = vmatpush.msra.mxu0 %v590_v48  ;;  %v804_v48 = vld [vmem:[%s3088_s11 + $0x28] sm:$0xff]  ;;  %v799_v2 = vld [vmem:[%s3088_s11] sm:$0xff] }
 0x232   :  { %564 = vmatpush.msra.mxu1 %v479_v58  ;;  %652 = vmatpush.msrb.mxu3 %v586_v12  ;;  %v774_v12 = vld [vmem:[%s3087_s10 + $0x58] sm:$0xff] }
 0x233   :  { %672 = vmatpush.msra.mxu0 %v587_v52  ;;  %v767_v52 = vld [vmem:[%s3087_s10 + $0x20] sm:$0xff] }
 0x234   :  { %565 = vmatpush.msra.mxu1 %v476_v62  ;;  %653 = vmatpush.msrb.mxu3 %v583_v13  ;;  %v578_v62 = vld [vmem:[#allocation2 + $0x28] sm:$0xff]  ;;  %v810_v13 = vld [vmem:[%s3088_s11 + $0x58] sm:$0xff] }
 0x235   :  { %673 = vmatpush.msra.mxu0 %v584_v56  ;;  %v766_v56 = vld [vmem:[%s3087_s10 + $0x18] sm:$0xff] }
 0x236   :  { %566 = vmatpush.msra.mxu1 %v473_v1  ;;  %654 = vmatpush.msrb.mxu3 %v580_v19  ;;  %v741_v1 = vld [vmem:[%s3086_s9 + $0x70] sm:$0xff] }
 0x237   :  { %674 = vmatpush.msra.mxu0 %v581_v61  ;;  %v809_v19 = vld [vmem:[%s3088_s11 + $0x50] sm:$0xff] }
 0x238   :  { %567 = vmatpush.msra.mxu1 %v470_v5  ;;  %655 = vmatpush.msrb.mxu3 %v577_v20  ;;  %v776_v5 = vld [vmem:[%s3087_s10 + $0x68] sm:$0xff]  ;;  %v729_v61 = vld [vmem:[%s3086_s9 + $0x10] sm:$0xff] }
 0x239   :  { %675 = vmatpush.msra.mxu0 %v578_v62  ;;  %781 = vmatpush.msrb.mxu2 %v776_v5  ;;  %v801_v62 = vld [vmem:[%s3088_s11 + $0x10] sm:$0xff] }
 0x23a   :  { %568 = vmatpush.msra.mxu1 %v467_v10  ;;  %656 = vmatpush.msrb.mxu3 %v574_v15  ;;  %v811_v10 = vld [vmem:[%s3088_s11 + $0x60] sm:$0xff]  ;;  %v736_v15 = vld [vmem:[%s3086_s9 + $0x48] sm:$0xff] }
 0x23b   :  { %676 = vmatpush.msra.mxu0 %v575_v25  ;;  %782 = vmatpush.msrb.mxu2 %v775_v9  ;;  %v728_v25 = vld [vmem:[%s3086_s9 + $0x8] sm:$0xff] }
 0x23d   :  { %783 = vmatpush.msrb.mxu2 %v774_v12 }
 0x23f   :  { %784 = vmatpush.msrb.mxu2 %v773_v18 }
 0x241   :  { %785 = vmatpush.msrb.mxu2 %v772_v21 }
 0x243   :  { %786 = vmatpush.msrb.mxu2 %v771_v27 }
 0x245   :  { %787 = vmatpush.msrb.mxu2 %v770_v32 }
 0x298   :  { %v409_v41 = vpop.f32.mrf.mxu1 }
 0x299   :  { %v426_v59 = vmul.f32 %v425_v57, %v409_v41  ;;  %v769_v41 = vld [vmem:[%s3087_s10 + $0x30] sm:$0xff]  ;;  %v802_v57 = vld [vmem:[%s3088_s11 + $0x18] sm:$0xff] }
 0x29a   :  { %788 = vmatpush.msrb.mxu2 %v769_v41 }
 0x29c   :  { %789 = vmatpush.msrb.mxu2 %v768_v47 }
 0x29e   :  { %790 = vmatpush.msrb.mxu2 %v767_v52 }
 0x2a0   :  { %v447_v58 = vpop.f32.mrf.mxu1  ;;  %v638_v20 = vpop.f32.mrf.mxu2  ;;  %791 = vmatpush.msrb.mxu2 %v766_v56 }
 0x2a1   :  { %v463_v60 = vmul.f32 %v462_v54, %v447_v58 }
 0x2a3   :  { %v464_v8 = vadd.f32 %v463_v60, %v426_v59 }
 0x2a5   :  { %529 = vmatmul.f32.vlgmr.msra.gmra.mxu3 %v464_v8  ;;  %549 = vmatmul.f32.vlgmr.msrb.gmra.mxu0 %v464_v8 }
 0x2a6   :  { %569 = vmatmul.f32.vlgmr.msra.gmra.mxu1 %v464_v8  ;;  %1654 = vmatpush.msk.msrb.mxu0 %vm2093_vm7, %v1915_v35  ;;  %v765_v8 = vld [vmem:[%s3087_s10 + $0x10] sm:$0xff] }
 0x2a7   :  { %815 = vmatpush.msra.mxu3 %v814_v0  ;;  %792 = vmatpush.msrb.mxu2 %v765_v8  ;;  %v727_v0 = vld [vmem:[%s3086_s9] sm:$0xff] }
 0x2a8   :  { %1655 = vmatpush.msk.msrb.mxu0 %vm2100_vm8, %v1915_v35 }
 0x2a9   :  { %816 = vmatpush.msra.mxu3 %v813_v3 }
 0x2aa   :  { %1656 = vmatpush.msk.msrb.mxu0 %vm2104_vm11, %v1915_v35 }
 0x2ab   :  { %817 = vmatpush.msra.mxu3 %v812_v6 }
 0x2ac   :  { %1657 = vmatpush.msk.msrb.mxu0 %vm2111_vm14, %v1915_v35 }
 0x2ad   :  { %657 = vmatmul.f32.vlgmr.msrb.gmra.mxu3 %v2079_v22  ;;  %677 = vmatmul.f32.vlgmr.msra.gmra.mxu0 %v2079_v22  ;;  %v742_v22 = vld [vmem:[%s3086_s9 + $0x78] sm:$0xff] }
 0x2ae   :  { %1658 = vmatpush.msk.msrb.mxu0 %vm2118_vm15, %v1915_v35  ;;  %743 = vmatpush.msrb.mxu1 %v742_v22  ;;  %v764_v22 = vld [vmem:[%s3087_s10 + $0x8] sm:$0xff] }
 0x2af   :  { %818 = vmatpush.msra.mxu3 %v811_v10  ;;  %793 = vmatpush.msrb.mxu2 %v764_v22 }
 0x2b0   :  { %1659 = vmatpush.msk.msrb.mxu0 %vm2136_vm3, %v1915_v35  ;;  %744 = vmatpush.msrb.mxu1 %v741_v1  ;;  %v763_v1 = vld [vmem:[%s3087_s10] sm:$0xff] }
 0x2b1   :  { %819 = vmatpush.msra.mxu3 %v810_v13  ;;  %794 = vmatpush.msrb.mxu2 %v763_v1 }
 0x2b2   :  { %1660 = vmatpush.msk.msrb.mxu0 %vm2145_vm10, %v1915_v35  ;;  %745 = vmatpush.msrb.mxu1 %v740_v4 }
 0x2b3   :  { %820 = vmatpush.msra.mxu3 %v809_v19  ;;  %1672 = vmatpush.msk.msra.mxu2 %vm2093_vm7, %v1915_v35 }
 0x2b4   :  { %1661 = vmatpush.msk.msrb.mxu0 %vm2152_vm12, %v1915_v35  ;;  %746 = vmatpush.msrb.mxu1 %v739_v7 }
 0x2b5   :  { %821 = vmatpush.msra.mxu3 %v808_v23  ;;  %1673 = vmatpush.msk.msra.mxu2 %vm2100_vm8, %v1915_v35 }
 0x2b6   :  { %1681 = vmatpush.msk.msra.mxu0 %vm2093_vm7, %v1915_v35  ;;  %747 = vmatpush.msrb.mxu1 %v738_v11 }
 0x2b7   :  { %822 = vmatpush.msra.mxu3 %v807_v29  ;;  %1674 = vmatpush.msk.msra.mxu2 %vm2104_vm11, %v1915_v35 }
 0x2b8   :  { %1682 = vmatpush.msk.msra.mxu0 %vm2100_vm8, %v1915_v35  ;;  %748 = vmatpush.msrb.mxu1 %v737_v14 }
 0x2b9   :  { %823 = vmatpush.msra.mxu3 %v806_v28  ;;  %1675 = vmatpush.msk.msra.mxu2 %vm2111_vm14, %v1915_v35 }
 0x2ba   :  { %1683 = vmatpush.msk.msra.mxu0 %vm2104_vm11, %v1915_v35  ;;  %749 = vmatpush.msrb.mxu1 %v736_v15 }
 0x2bb   :  { %824 = vmatpush.msra.mxu3 %v805_v42  ;;  %1676 = vmatpush.msk.msra.mxu2 %vm2118_vm15, %v1915_v35 }
 0x2bc   :  { %1684 = vmatpush.msk.msra.mxu0 %vm2111_vm14, %v1915_v35  ;;  %750 = vmatpush.msrb.mxu1 %v735_v26 }
 0x2bd   :  { %825 = vmatpush.msra.mxu3 %v804_v48  ;;  %1677 = vmatpush.msk.msra.mxu2 %vm2136_vm3, %v1915_v35 }
 0x2be   :  { %1685 = vmatpush.msk.msra.mxu0 %vm2118_vm15, %v1915_v35  ;;  %751 = vmatpush.msrb.mxu1 %v734_v31 }
 0x2bf   :  { %826 = vmatpush.msra.mxu3 %v803_v53  ;;  %1678 = vmatpush.msk.msra.mxu2 %vm2145_vm10, %v1915_v35 }
 0x2c0   :  { %1686 = vmatpush.msk.msra.mxu0 %vm2136_vm3, %v1915_v35  ;;  %752 = vmatpush.msrb.mxu1 %v733_v40  ;;  %v2674_v40 = vld [vmem:[%s3078_s1] sm:$0x3]  ;;  %s1924_s1 = smov 112  }
 0x2c1   :  { %827 = vmatpush.msra.mxu3 %v802_v57  ;;  %1679 = vmatpush.msk.msra.mxu2 %vm2152_vm12, %v1915_v35 }
 0x2c2   :  { %1687 = vmatpush.msk.msra.mxu0 %vm2145_vm10, %v1915_v35  ;;  %753 = vmatpush.msrb.mxu1 %v732_v43 }
 0x2c3   :  { %828 = vmatpush.msra.mxu3 %v801_v62 }
 0x2c4   :  { %1688 = vmatpush.msk.msra.mxu0 %vm2152_vm12, %v1915_v35  ;;  %754 = vmatpush.msrb.mxu1 %v731_v51 }
 0x2c5   :  { %829 = vmatpush.msra.mxu3 %v800_v63 }
 0x2c6   :  { %755 = vmatpush.msrb.mxu1 %v730_v55 }
 0x2c7   :  { %830 = vmatpush.msra.mxu3 %v799_v2  ;;  %v1713_v2 = vld [vmem:[%s3086_s9 + $0xf8] sm:$0xff] }
 0x2c8   :  { %756 = vmatpush.msrb.mxu1 %v729_v61 }
 0x2c9   :  { %1696 = vmatpush.msk.msrb.mxu3 %vm3124_vm6, %v2220_v16 }
 0x2ca   :  { %757 = vmatpush.msrb.mxu1 %v728_v25 }
 0x2cc   :  { %758 = vmatpush.msrb.mxu1 %v727_v0 }
 0x2ce   :  { %1663 = vmatpush.msk.msra.mxu1 %vm2093_vm7, %v1915_v35 }
 0x2d0   :  { %1664 = vmatpush.msk.msra.mxu1 %vm2100_vm8, %v1915_v35 }
 0x2d2   :  { %1665 = vmatpush.msk.msra.mxu1 %vm2104_vm11, %v1915_v35 }
 0x2d4   :  { %1666 = vmatpush.msk.msra.mxu1 %vm2111_vm14, %v1915_v35 }
 0x2d6   :  { %1667 = vmatpush.msk.msra.mxu1 %vm2118_vm15, %v1915_v35 }
 0x2d8   :  { %1668 = vmatpush.msk.msra.mxu1 %vm2136_vm3, %v1915_v35 }
 0x2da   :  { %1669 = vmatpush.msk.msra.mxu1 %vm2145_vm10, %v1915_v35 }
 0x2dc   :  { %1670 = vmatpush.msk.msra.mxu1 %vm2152_vm12, %v1915_v35 }
 0x322   :  { %v550_v49 = vpop.f32.mrf.mxu0 }
 0x328   :  { %v530_v24 = vpop.f32.mrf.mxu3 }
 0x329   :  { %v681_v30 = vadd.f32 %v638_v20, %v530_v24  ;;  %v570_v24 = vpop.f32.mrf.mxu1 }
 0x32a   :  { %v678_v14 = vpop.f32.mrf.mxu0 }
 0x32b   :  { %v1652_v33 = vmul.f32 -1.442695, %v681_v30 }
 0x32d   :  { %1824 = vpow2.f32 %v1652_v33 }
 0x330   :  { %v658_v50 = vpop.f32.mrf.mxu3 }
 0x331   :  { %v701_v54 = vadd.f32 %v658_v50, %v550_v49 }
 0x333   :  { %v1825_v58 = vpop.eup %1824  ;;  %v1653_v59 = vmul.f32 -1.442695, %v701_v54 }
 0x334   :  { %v685_v60 = vadd.f32 1.0, %v1825_v58 }
 0x335   :  { %1826 = vpow2.f32 %v1653_v59 }
 0x336   :  { %1828 = vrcp.f32 %v685_v60  ;;  %v697_v9 = vand.u32 2147483648, %v685_v60  ;;  %v695_v11 = vand.u32 2147483647, %v685_v60  ;;  %vm691_vm2 = vweird.f32 %v685_v60 }
 0x338   :  { %v698_v18 = vor.u32 1.1754944e-38, %v697_v9  ;;  %vm696_vm1 = vcmp.eq.f32.partialorder %v695_v11, 8.507059e+37  ;;  %v1708_v11 = vld [vmem:[%s3086_s9 + $0xd0] sm:$0xff] }
 0x33b   :  { %v1827_v3 = vpop.eup %1826 }
 0x33c   :  { %v1829_v4 = vpop.eup %1828  ;;  %v705_v5 = vadd.f32 1.0, %v1827_v3 }
 0x33d   :  { %v687_v6 = vmul.f32 %v1829_v4, %v685_v60  ;;  %vm692_vm0 = vweird.f32 %v1829_v4 }
 0x33e   :  { %1830 = vrcp.f32 %v705_v5  ;;  %vm693_vm5 = vmor %vm691_vm2, %vm692_vm0  ;;  %v717_v30 = vand.u32 2147483648, %v705_v5  ;;  %vm711_vm6 = vweird.f32 %v705_v5  ;;  %v715_v31 = vand.u32 2147483647, %v705_v5 }
 0x33f   :  { %v688_v7 = vsub.f32 1.0, %v687_v6 }
 0x340   :  { %v718_v33 = vor.u32 1.1754944e-38, %v717_v30  ;;  %vm716_vm2 = vcmp.eq.f32.partialorder %v715_v31, 8.507059e+37  ;;  %v1742_v30 = vld [vmem:[%s3088_s11 + $0xe0] sm:$0xff]  ;;  %v1741_v31 = vld [vmem:[%s3088_s11 + $0xd8] sm:$0xff] }
 0x341   :  { %v689_v10 = vmul.f32 %v1829_v4, %v688_v7  ;;  %v1710_v7 = vld [vmem:[%s3086_s9 + $0xe0] sm:$0xff] }
 0x343   :  { %v690_v12 = vadd.f32 %v1829_v4, %v689_v10  ;;  %v1709_v10 = vld [vmem:[%s3086_s9 + $0xd8] sm:$0xff] }
 0x344   :  { %v1831_v13 = vpop.eup %1830 }
 0x345   :  { %v707_v19 = vmul.f32 %v1831_v13, %v705_v5  ;;  %v694_v20 = vsel %vm693_vm5, %v1829_v4, %v690_v12  ;;  %vm712_vm4 = vweird.f32 %v1831_v13  ;;  %vm3125_vm5 = vcmask 1043456   ;;  %v1712_v4 = vld [vmem:[%s3086_s9 + $0xf0] sm:$0xff]  ;;  %v1711_v5 = vld [vmem:[%s3086_s9 + $0xe8] sm:$0xff] }
 0x346   :  { %v699_v15 = vsel %vm696_vm1, %v698_v18, %v694_v20  ;;  %vm713_vm0 = vmor %vm711_vm6, %vm712_vm4  ;;  %vm3127_vm4 = vcmask 130048   ;;  %v1707_v12 = vld [vmem:[%s3086_s9 + $0xc8] sm:$0xff]  ;;  %v1704_v18 = vld [vmem:[%s3086_s9 + $0xb0] sm:$0xff] }
 0x347   :  { %v708_v21 = vsub.f32 1.0, %v707_v19  ;;  %v721_v23 = vmul.f32 %v699_v15, %v678_v14  ;;  %vm3126_vm1 = vmmov %vm3125_vm5  ;;  %v1705_v14 = vld [vmem:[%s3086_s9 + $0xb8] sm:$0xff]  ;;  %v1703_v19 = vld [vmem:[%s3086_s9 + $0xa8] sm:$0xff] }
 0x348   :  { %vm3128_vm6 = vmmov %vm3127_vm4  ;;  %v1702_v20 = vld [vmem:[%s3086_s9 + $0xa0] sm:$0xff]  ;;  %v1701_v15 = vld [vmem:[%s3086_s9 + $0x98] sm:$0xff] }
 0x349   :  { %v709_v26 = vmul.f32 %v1831_v13, %v708_v21  ;;  %v722_v27 = vadd.f32 %v721_v23, %v570_v24  ;;  %v1700_v21 = vld [vmem:[%s3086_s9 + $0x90] sm:$0xff]  ;;  %v1699_v23 = vld [vmem:[%s3086_s9 + $0x88] sm:$0xff]  ;;  %v1698_v24 = vld [vmem:[%s3086_s9 + $0x80] sm:$0xff] }
 0x34b   :  { %1832 = vtanh.f32 %v722_v27  ;;  %v710_v29 = vadd.f32 %v1831_v13, %v709_v26  ;;  %v1745_v26 = vld [vmem:[%s3088_s11 + $0xf8] sm:$0xff]  ;;  %v1744_v27 = vld [vmem:[%s3088_s11 + $0xf0] sm:$0xff] }
 0x34d   :  { %v714_v32 = vsel %vm713_vm0, %v1831_v13, %v710_v29  ;;  %vm3129_vm0 = vcmask 261120   ;;  %v1706_v13 = vld [vmem:[%s3086_s9 + $0xc0] sm:$0xff]  ;;  %v1743_v29 = vld [vmem:[%s3088_s11 + $0xe8] sm:$0xff] }
 0x34e   :  { %v719_v42 = vsel %vm716_vm2, %v718_v33, %v714_v32  ;;  %vm3130_vm2 = vmmov %vm3129_vm0  ;;  %v1740_v32 = vld [vmem:[%s3088_s11 + $0xd0] sm:$0xff] }
 0x351   :  { %v1833_v28 = vpop.eup %1832 }
 0x352   :  { %v724_v41 = vsub.f32 %v2674_v40, %v1833_v28 }
 0x354   :  { %v725_v43 = vmul.f32 %v724_v41, %v719_v42  ;;  %v1739_v41 = vld [vmem:[%s3088_s11 + $0xc8] sm:$0xff] }
 0x356   :  { %v2677_v47 = vadd.f32 %v1833_v28, %v725_v43  ;;  %v1738_v43 = vld [vmem:[%s3088_s11 + $0xc0] sm:$0xff] }
 0x358   :  { %759 = vmatmul.f32.vlgmr.msrb.gmra.mxu1 %v2677_v47  ;;  %795 = vmatmul.f32.vlgmr.msrb.gmra.mxu2 %v2677_v47 }
 0x359   :  { %831 = vmatmul.f32.vlgmr.msra.gmra.mxu3 %v2677_v47  ;;  %1694 = vmatpush.msk.msrb.mxu2 %vm3125_vm5, %v2220_v16  ;;  %vm3131_vm5 = vcmask 392192  }
 0x35a   :  { %1690 = vmatpush.msk.msrb.mxu1 %vm3126_vm1, %v2220_v16  ;;  %1746 = vmatpush.msk.msra.mxu3 %vm2093_vm7, %v1915_v35  ;;  %vm3132_vm1 = vmmov %vm3131_vm5 }
 0x35c   :  { %1747 = vmatpush.msk.msra.mxu3 %vm2100_vm8, %v1915_v35 }
 0x35e   :  { %1748 = vmatpush.msk.msra.mxu3 %vm2104_vm11, %v1915_v35 }
 0x360   :  { %1749 = vmatpush.msk.msra.mxu3 %vm2111_vm14, %v1915_v35 }
 0x362   :  { %1750 = vmatpush.msk.msra.mxu3 %vm2118_vm15, %v1915_v35 }
 0x364   :  { %1751 = vmatpush.msk.msra.mxu3 %vm2136_vm3, %v1915_v35 }
 0x366   :  { %1752 = vmatpush.msk.msra.mxu3 %vm2145_vm10, %v1915_v35 }
 0x368   :  { %1753 = vmatpush.msk.msra.mxu3 %vm2152_vm12, %v1915_v35  ;;  %vm3135_vm12 = vmmov %vm3127_vm4 }
 0x3d5   :  { %v760_v57 = vpop.f32.mrf.mxu1 }
 0x3db   :  { %v796_v48 = vpop.f32.mrf.mxu2 }
 0x3dc   :  { %904 = vrot.lane.b32.xlu1 %v796_v48, %s1922_s29  ;;  %873 = vrot.lane.b32.xlu0 %v796_v48, %s1924_s1 }
 0x3dd   :  { %836 = vrot.lane.b32.xlu2 %v796_v48, %s1916_s6 }
 0x3e4   :  { %935 = vrot.lane.b32.xlu1 %v796_v48, %s1925_s25  ;;  %842 = vrot.lane.b32.xlu0 %v796_v48, %s1914_s14 }
 0x3e5   :  { %839 = vrot.lane.b32.xlu2 %v796_v48, %s1913_s23 }
 0x437   :  { %v837_v49 = vpop.permute.xlu2 %836 }
 0x438   :  { %v845_v8 = vsel %vm3135_vm12, %v796_v48, %v837_v49 }
 0x43f   :  { %v840_v54 = vpop.permute.xlu2 %839 }
 0x44e   :  { %v905_v50 = vpop.permute.xlu1 %904  ;;  %v874_v51 = vpop.permute.xlu0 %873 }
 0x44f   :  { %v876_v52 = vsel %vm3127_vm4, %v874_v51, %v796_v48  ;;  %v907_v53 = vsel %vm3128_vm6, %v905_v50, %v874_v51  ;;  %vm3136_vm4 = vcmask 1043456   ;;  %vm3137_vm6 = vmmov %vm3129_vm0 }
 0x450   :  { %v877_v55 = vsel %vm3129_vm0, %v876_v52, %v837_v49  ;;  %v908_v56 = vsel %vm3130_vm2, %v907_v53, %v796_v48  ;;  %v846_v62 = vsel %vm3137_vm6, %v845_v8, %v840_v54  ;;  %vm3138_vm0 = vmmov %vm3135_vm12  ;;  %v1736_v52 = vld [vmem:[%s3088_s11 + $0xb0] sm:$0xff]  ;;  %v1735_v53 = vld [vmem:[%s3088_s11 + $0xa8] sm:$0xff] }
 0x451   :  { %v878_v58 = vsel %vm3131_vm5, %v877_v55, %v840_v54  ;;  %v909_v59 = vsel %vm3132_vm1, %v908_v56, %v837_v49  ;;  %vm3139_vm2 = vmmov %vm3132_vm1  ;;  %v1734_v56 = vld [vmem:[%s3088_s11 + $0xa0] sm:$0xff] }
 0x452   :  { %v879_v60 = vmul.f32 %v878_v58, %v760_v57  ;;  %v910_v61 = vmul.f32 %v909_v59, %v760_v57  ;;  %vm3141_vm12 = vmmov %vm3132_vm1  ;;  %vm3143_vm1 = vnez %v3115_v46  ;;  %v1128_v46 = vld [vmem:[#allocation4 + $0x68] sm:$0xff] }
 0x453   :  { %vm3142_vm5 = vmmov %vm3134_vm13 }
 0x454   :  { %1671 = vmatmul.msk.f32.vlgmr.msra.gmra.mxu1 %vm3133_vm9, %v879_v60  ;;  %1680 = vmatmul.msk.f32.vlgmr.msra.gmra.mxu2 %vm3134_vm13, %v910_v61  ;;  %vm3140_vm9 = vmmov %vm3137_vm6  ;;  %v1733_v60 = vld [vmem:[%s3088_s11 + $0x98] sm:$0xff] }
 0x455   :  { %1692 = vmatpush.msk.msra.mxu1 %vm3136_vm4, %v2220_v16  ;;  %1222 = vmatpush.msra.mxu2 %v1745_v26  ;;  %vm3144_vm4 = vcmask 31744   ;;  %v1727_v26 = vld [vmem:[%s3087_s10 + $0xe8] sm:$0xff] }
 0x456   :  { %v936_v25 = vpop.permute.xlu1 %935  ;;  %v843_v22 = vpop.permute.xlu0 %842  ;;  %vm3145_vm6 = vmmov %vm3144_vm4 }
 0x457   :  { %v938_v63 = vsel %vm3138_vm0, %v936_v25, %v905_v50  ;;  %v847_v0 = vsel %vm3139_vm2, %v846_v62, %v843_v22  ;;  %1223 = vmatpush.msra.mxu2 %v1744_v27  ;;  %v1737_v50 = vld [vmem:[%s3088_s11 + $0xb8] sm:$0xff]  ;;  %v1732_v25 = vld [vmem:[%s3088_s11 + $0x90] sm:$0xff]  ;;  %vm3146_vm0 = vmmov %vm3144_vm4  ;;  %vm3147_vm2 = vcmask 1043456  }
 0x458   :  { %v848_v1 = vmul.f32 %v847_v0, %v760_v57  ;;  %v939_v3 = vsel %vm3140_vm9, %v938_v63, %v874_v51  ;;  %vm3148_vm9 = vmmov %vm3146_vm0 }
 0x459   :  { %v940_v6 = vsel %vm3141_vm12, %v939_v3, %v796_v48  ;;  %1224 = vmatpush.msra.mxu2 %v1743_v29  ;;  %v1730_v3 = vld [vmem:[%s3088_s11 + $0x80] sm:$0xff] }
 0x45a   :  { %1662 = vmatmul.msk.f32.vlgmr.msrb.gmra.mxu0 %vm3134_vm13, %v848_v1  ;;  %v941_v9 = vmul.f32 %v940_v6, %v760_v57  ;;  %v1726_v29 = vld [vmem:[%s3087_s10 + $0xe0] sm:$0xff]  ;;  %vm3149_vm13 = vmmov %vm3147_vm2 }
 0x45b   :  { %1148 = vmatpush.msrb.mxu0 %v1713_v2  ;;  %1225 = vmatpush.msra.mxu2 %v1742_v30  ;;  %v1731_v2 = vld [vmem:[%s3088_s11 + $0x88] sm:$0xff] }
 0x45d   :  { %1149 = vmatpush.msrb.mxu0 %v1712_v4  ;;  %1226 = vmatpush.msra.mxu2 %v1741_v31  ;;  %v1725_v31 = vld [vmem:[%s3087_s10 + $0xd8] sm:$0xff] }
 0x45f   :  { %1150 = vmatpush.msrb.mxu0 %v1711_v5  ;;  %1227 = vmatpush.msra.mxu2 %v1740_v32  ;;  %v1724_v32 = vld [vmem:[%s3087_s10 + $0xd0] sm:$0xff] }
 0x461   :  { %1151 = vmatpush.msrb.mxu0 %v1710_v7  ;;  %1228 = vmatpush.msra.mxu2 %v1739_v41  ;;  %v1721_v41 = vld [vmem:[%s3087_s10 + $0xb8] sm:$0xff] }
 0x462   :  { %1689 = vmatmul.msk.f32.vlgmr.msra.gmra.mxu0 %vm3142_vm5, %v941_v9 }
 0x463   :  { %1152 = vmatpush.msrb.mxu0 %v1709_v10  ;;  %1229 = vmatpush.msra.mxu2 %v1738_v43  ;;  %v1719_v43 = vld [vmem:[%s3087_s10 + $0xa8] sm:$0xff] }
 0x465   :  { %1153 = vmatpush.msrb.mxu0 %v1708_v11  ;;  %1230 = vmatpush.msra.mxu2 %v1737_v50  ;;  %v1716_v50 = vld [vmem:[%s3087_s10 + $0x90] sm:$0xff] }
 0x467   :  { %1154 = vmatpush.msrb.mxu0 %v1707_v12  ;;  %1231 = vmatpush.msra.mxu2 %v1736_v52  ;;  %v1714_v52 = vld [vmem:[%s3087_s10 + $0x80] sm:$0xff] }
 0x469   :  { %1155 = vmatpush.msrb.mxu0 %v1706_v13  ;;  %1232 = vmatpush.msra.mxu2 %v1735_v53  ;;  %v1127_v53 = vld [vmem:[#allocation4 + $0x60] sm:$0xff] }
 0x46b   :  { %1156 = vmatpush.msrb.mxu0 %v1705_v14  ;;  %1233 = vmatpush.msra.mxu2 %v1734_v56  ;;  %v1124_v56 = vld [vmem:[#allocation4 + $0x48] sm:$0xff] }
 0x46d   :  { %1157 = vmatpush.msrb.mxu0 %v1704_v18  ;;  %1234 = vmatpush.msra.mxu2 %v1733_v60  ;;  %v1120_v60 = vld [vmem:[#allocation4 + $0x28] sm:$0xff] }
 0x46f   :  { %1158 = vmatpush.msrb.mxu0 %v1703_v19  ;;  %1235 = vmatpush.msra.mxu2 %v1732_v25  ;;  %v1117_v25 = vld [vmem:[#allocation4 + $0x10] sm:$0xff] }
 0x471   :  { %1159 = vmatpush.msrb.mxu0 %v1702_v20  ;;  %1236 = vmatpush.msra.mxu2 %v1731_v2  ;;  %v1115_v2 = vld [vmem:[#allocation4] sm:$0xff] }
 0x473   :  { %1160 = vmatpush.msrb.mxu0 %v1701_v15  ;;  %1237 = vmatpush.msra.mxu2 %v1730_v3 }
 0x475   :  { %1161 = vmatpush.msrb.mxu0 %v1700_v21 }
 0x477   :  { %1162 = vmatpush.msrb.mxu0 %v1699_v23  ;;  %v1729_v23 = vld [vmem:[%s3087_s10 + $0xf8] sm:$0xff] }
 0x479   :  { %1163 = vmatpush.msrb.mxu0 %v1698_v24  ;;  %v1728_v24 = vld [vmem:[%s3087_s10 + $0xf0] sm:$0xff] }
 0x47a   :  { %1164 = vmatmul.f32.vlgmr.msrb.gmra.mxu0 %v2677_v47 }
 0x47b   :  { %1764 = vmatpush.msk.msra.mxu0 %vm2093_vm7, %v1915_v35 }
 0x47d   :  { %1765 = vmatpush.msk.msra.mxu0 %vm2100_vm8, %v1915_v35 }
 0x47f   :  { %1766 = vmatpush.msk.msra.mxu0 %vm2104_vm11, %v1915_v35 }
 0x481   :  { %1767 = vmatpush.msk.msra.mxu0 %vm2111_vm14, %v1915_v35 }
 0x483   :  { %1768 = vmatpush.msk.msra.mxu0 %vm2118_vm15, %v1915_v35 }
 0x485   :  { %1769 = vmatpush.msk.msra.mxu0 %vm2136_vm3, %v1915_v35 }
 0x487   :  { %1770 = vmatpush.msk.msra.mxu0 %vm2145_vm10, %v1915_v35 }
 0x489   :  { %1771 = vmatpush.msk.msra.mxu0 %vm3143_vm1, %v1915_v35 }
 0x4d1   :  { %v900_v28 = vpop.f32.mrf.mxu1 }
 0x4d2   :  { %v903_v48 = vmul.f32 0.25, %v900_v28  ;;  %v1723_v28 = vld [vmem:[%s3087_s10 + $0xc8] sm:$0xff] }
 0x4d7   :  { %v869_v33 = vpop.f32.mrf.mxu0  ;;  %v931_v49 = vpop.f32.mrf.mxu2 }
 0x4d8   :  { %v872_v42 = vmul.f32 0.25, %v869_v33  ;;  %v934_v54 = vmul.f32 0.25, %v931_v49  ;;  %v1722_v33 = vld [vmem:[%s3087_s10 + $0xc0] sm:$0xff]  ;;  %v1717_v49 = vld [vmem:[%s3087_s10 + $0x98] sm:$0xff] }
 0x4da   :  { %v966_v51 = vmax.f32 %v872_v42, %v903_v48 }
 0x4dc   :  { %v967_v57 = vmax.f32 %v966_v51, %v934_v54  ;;  %v1715_v51 = vld [vmem:[%s3087_s10 + $0x88] sm:$0xff] }
 0x4df   :  { %v962_v55 = vpop.f32.mrf.mxu0 }
 0x4e0   :  { %v965_v58 = vmul.f32 0.25, %v962_v55  ;;  %v1125_v55 = vld [vmem:[#allocation4 + $0x50] sm:$0xff] }
 0x4e2   :  { %v968_v59 = vmax.f32 %v967_v57, %v965_v58  ;;  %v1123_v57 = vld [vmem:[#allocation4 + $0x40] sm:$0xff] }
 0x4e4   :  { %v969_v61 = vsub.f32 %v872_v42, %v968_v59  ;;  %v972_v8 = vsub.f32 %v903_v48, %v968_v59  ;;  %v975_v62 = vsub.f32 %v934_v54, %v968_v59  ;;  %v978_v22 = vsub.f32 %v965_v58, %v968_v59  ;;  %v1720_v42 = vld [vmem:[%s3087_s10 + $0xb0] sm:$0xff]  ;;  %v1718_v48 = vld [vmem:[%s3087_s10 + $0xa0] sm:$0xff]  ;;  %v1126_v54 = vld [vmem:[#allocation4 + $0x58] sm:$0xff] }
 0x4e5   :  { %v1122_v58 = vld [vmem:[#allocation4 + $0x38] sm:$0xff]  ;;  %v1121_v59 = vld [vmem:[#allocation4 + $0x30] sm:$0xff] }
 0x4e6   :  { %v970_v63 = vmul.f32 1.442695, %v969_v61  ;;  %v973_v0 = vmul.f32 1.442695, %v972_v8  ;;  %v976_v1 = vmul.f32 1.442695, %v975_v62 }
 0x4e7   :  { %v979_v4 = vmul.f32 1.442695, %v978_v22  ;;  %v1119_v8 = vld [vmem:[#allocation4 + $0x20] sm:$0xff]  ;;  %v1118_v62 = vld [vmem:[#allocation4 + $0x18] sm:$0xff]  ;;  %v1116_v22 = vld [vmem:[#allocation4 + $0x8] sm:$0xff] }
 0x4e8   :  { %1834 = vpow2.f32 %v970_v63 }
 0x4e9   :  { %1836 = vpow2.f32 %v973_v0 }
 0x4ea   :  { %1838 = vpow2.f32 %v976_v1 }
 0x4eb   :  { %1840 = vpow2.f32 %v979_v4 }
 0x4ee   :  { %v1835_v5 = vpop.eup %1834 }
 0x4ef   :  { %v1837_v6 = vpop.eup %1836 }
 0x4f0   :  { %v981_v7 = vadd.f32 %v1837_v6, %v1835_v5  ;;  %v1839_v9 = vpop.eup %1838 }
 0x4f1   :  { %v1841_v11 = vpop.eup %1840 }
 0x4f2   :  { %v982_v10 = vadd.f32 %v1839_v9, %v981_v7 }
 0x4f4   :  { %v983_v12 = vadd.f32 %v1841_v11, %v982_v10 }
 0x4f6   :  { %1842 = vrcp.f32 %v983_v12 }
 0x4fc   :  { %v1843_v13 = vpop.eup %1842 }
 0x4fd   :  { %v1085_v14 = vmul.f32 %v1843_v13, %v1841_v11  ;;  %v985_v18 = vmul.f32 %v1843_v13, %v1835_v5  ;;  %v1055_v19 = vmul.f32 %v1843_v13, %v1839_v9  ;;  %v1025_v27 = vmul.f32 %v1843_v13, %v1837_v6  ;;  %v1165_v5 = vpop.f32.mrf.mxu0 }
 0x4ff   :  { %v986_v20 = vmul.f32 %v2328_v17, %v985_v18  ;;  %v1056_v15 = vmul.f32 %v2328_v17, %v1055_v19  ;;  %v1086_v21 = vmul.f32 %v2328_v17, %v1085_v14  ;;  %v1026_v30 = vmul.f32 %v2328_v17, %v1025_v27 }
 0x501   :  { %1691 = vmatmul.msk.f32.vlgmr.msrb.gmra.mxu1 %vm3144_vm4, %v986_v20  ;;  %1695 = vmatmul.msk.f32.vlgmr.msrb.gmra.mxu2 %vm3145_vm6, %v1056_v15 }
 0x502   :  { %1697 = vmatmul.msk.f32.vlgmr.msrb.gmra.mxu3 %vm3146_vm0, %v1086_v21  ;;  %1185 = vmatpush.msrb.mxu1 %v1729_v23 }
 0x503   :  { %1755 = vmatpush.msk.msrb.mxu3 %vm2093_vm7, %v1915_v35  ;;  %1782 = vmatpush.msk.msrb.mxu2 %vm3147_vm2, %v2220_v16 }
 0x504   :  { %1186 = vmatpush.msrb.mxu1 %v1728_v24 }
 0x505   :  { %1756 = vmatpush.msk.msrb.mxu3 %vm2100_vm8, %v1915_v35 }
 0x506   :  { %1187 = vmatpush.msrb.mxu1 %v1727_v26 }
 0x507   :  { %1757 = vmatpush.msk.msrb.mxu3 %vm2104_vm11, %v1915_v35 }
 0x508   :  { %1188 = vmatpush.msrb.mxu1 %v1726_v29 }
 0x509   :  { %1693 = vmatmul.msk.f32.vlgmr.msra.gmra.mxu1 %vm3148_vm9, %v1026_v30  ;;  %1238 = vmatmul.f32.vlgmr.msra.gmra.mxu2 %v2677_v47 }
 0x50a   :  { %1189 = vmatpush.msrb.mxu1 %v1725_v31  ;;  %1758 = vmatpush.msk.msrb.mxu3 %vm2111_vm14, %v1915_v35 }
 0x50b   :  { %1786 = vmatpush.msk.msra.mxu2 %vm3149_vm13, %v2220_v16 }
 0x50c   :  { %1190 = vmatpush.msrb.mxu1 %v1724_v32  ;;  %1759 = vmatpush.msk.msrb.mxu3 %vm2118_vm15, %v1915_v35 }
 0x50e   :  { %1191 = vmatpush.msrb.mxu1 %v1723_v28  ;;  %1760 = vmatpush.msk.msrb.mxu3 %vm2136_vm3, %v1915_v35 }
 0x510   :  { %1192 = vmatpush.msrb.mxu1 %v1722_v33  ;;  %1761 = vmatpush.msk.msrb.mxu3 %vm2145_vm10, %v1915_v35 }
 0x512   :  { %1193 = vmatpush.msrb.mxu1 %v1721_v41  ;;  %1762 = vmatpush.msk.msrb.mxu3 %vm3143_vm1, %v1915_v35 }
 0x514   :  { %1194 = vmatpush.msrb.mxu1 %v1720_v42 }
 0x516   :  { %1195 = vmatpush.msrb.mxu1 %v1719_v43 }
 0x518   :  { %1196 = vmatpush.msrb.mxu1 %v1718_v48 }
 0x51a   :  { %1197 = vmatpush.msrb.mxu1 %v1717_v49 }
 0x51c   :  { %1198 = vmatpush.msrb.mxu1 %v1716_v50 }
 0x51e   :  { %1199 = vmatpush.msrb.mxu1 %v1715_v51 }
 0x520   :  { %1200 = vmatpush.msrb.mxu1 %v1714_v52 }
 0x521   :  { %1201 = vmatmul.f32.vlgmr.msrb.gmra.mxu1 %v2677_v47 }
 0x522   :  { %1773 = vmatpush.msk.msra.mxu1 %vm2093_vm7, %v1915_v35  ;;  %vm3150_vm7 = vcmask 130048  }
 0x524   :  { %1774 = vmatpush.msk.msra.mxu1 %vm2100_vm8, %v1915_v35  ;;  %vm3151_vm8 = vcmask 261120  }
 0x525   :  { %vm3160_vm4 = vmmov %vm3151_vm8 }
 0x526   :  { %1775 = vmatpush.msk.msra.mxu1 %vm2104_vm11, %v1915_v35  ;;  %vm3152_vm11 = vmmov %vm3141_vm12 }
 0x527   :  { %vm3157_vm12 = vmmov %vm3152_vm11 }
 0x528   :  { %1776 = vmatpush.msk.msra.mxu1 %vm2111_vm14, %v1915_v35  ;;  %vm3153_vm14 = vmmov %vm3150_vm7 }
 0x529   :  { %vm3161_vm6 = vmmov %vm3160_vm4 }
 0x52a   :  { %1777 = vmatpush.msk.msra.mxu1 %vm2118_vm15, %v1915_v35  ;;  %vm3154_vm15 = vmmov %vm3142_vm5 }
 0x52b   :  { %vm3158_vm5 = vmmov %vm3150_vm7 }
 0x52c   :  { %1778 = vmatpush.msk.msra.mxu1 %vm2136_vm3, %v1915_v35  ;;  %vm3155_vm3 = vmmov %vm3147_vm2 }
 0x52d   :  { %vm3162_vm0 = vmmov %vm3152_vm11 }
 0x52e   :  { %1779 = vmatpush.msk.msra.mxu1 %vm2145_vm10, %v1915_v35  ;;  %vm3156_vm10 = vmmov %vm3151_vm8 }
 0x52f   :  { %vm3163_vm2 = vmmov %vm3162_vm0 }
 0x530   :  { %1780 = vmatpush.msk.msra.mxu1 %vm3143_vm1, %v1915_v35  ;;  %v2985_v35 = vpop.f32.mrf.mxu3  ;;  %vm3159_vm1 = vmmov %vm3158_vm5 }
 0x531   :  { %vm3164_vm9 = vmmov %vm3154_vm15 }
 0x532   :  { %1559 = vmatpush.msrb.mxu1 %v1130_v44  ;;  %vm3165_vm13 = vmmov %vm3164_vm9 }
 0x534   :  { %1560 = vmatpush.msrb.mxu1 %v1129_v45 }
 0x536   :  { %1561 = vmatpush.msrb.mxu1 %v1128_v46 }
 0x538   :  { %1562 = vmatpush.msrb.mxu1 %v1127_v53 }
 0x53a   :  { %1563 = vmatpush.msrb.mxu1 %v1126_v54 }
 0x53c   :  { %1564 = vmatpush.msrb.mxu1 %v1125_v55 }
 0x53e   :  { %1565 = vmatpush.msrb.mxu1 %v1124_v56 }
 0x540   :  { %1566 = vmatpush.msrb.mxu1 %v1123_v57 }
 0x542   :  { %1567 = vmatpush.msrb.mxu1 %v1122_v58 }
 0x544   :  { %1568 = vmatpush.msrb.mxu1 %v1121_v59 }
 0x546   :  { %1569 = vmatpush.msrb.mxu1 %v1120_v60 }
 0x548   :  { %1570 = vmatpush.msrb.mxu1 %v1119_v8 }
 0x54a   :  { %1571 = vmatpush.msrb.mxu1 %v1118_v62 }
 0x54c   :  { %1572 = vmatpush.msrb.mxu1 %v1117_v25 }
 0x54e   :  { %1573 = vmatpush.msrb.mxu1 %v1116_v22 }
 0x550   :  { %1574 = vmatpush.msrb.mxu1 %v1115_v2 }
 0x57e   :  { %v2965_v34 = vpop.f32.mrf.mxu1 }
 0x584   :  { %v2977_v38 = vpop.f32.mrf.mxu2 }
 0x585   :  { %v1107_v53 = vpop.f32.mrf.mxu3 }
 0x586   :  { %v2967_v36 = vpop.f32.mrf.mxu1 }
 0x58c   :  { %v2987_v39 = vpop.f32.mrf.mxu2 }
 0x59e   :  { %v2969_v37 = vpop.f32.mrf.mxu1 }
 0x59f   :  { %1249 = vrot.lane.b32.xlu1 %v2969_v37, %s1914_s14  ;;  %1246 = vrot.lane.b32.xlu0 %v2969_v37, %s1913_s23 }
 0x5a0   :  { %1243 = vrot.lane.b32.xlu2 %v2969_v37, %s1916_s6 }
 0x5a7   :  { %1342 = vrot.lane.b32.xlu1 %v2969_v37, %s1925_s25  ;;  %1311 = vrot.lane.b32.xlu0 %v2969_v37, %s1922_s29 }
 0x5a8   :  { %1280 = vrot.lane.b32.xlu2 %v2969_v37, %s1924_s1 }
 0x5af   :  { %1418 = vrot.lane.b32.xlu1 %v2987_v39, %s1913_s23  ;;  %1017 = vrot.lane.b32.xlu0 %v2985_v35, %s1922_s29 }
 0x5b0   :  { %1011 = vrot.lane.b32.xlu2 %v2985_v35, %s1913_s23 }
 0x5b7   :  { %1421 = vrot.lane.b32.xlu1 %v2987_v39, %s1921_s28  ;;  %1014 = vrot.lane.b32.xlu0 %v2985_v35, %s1921_s28 }
 0x5b8   :  { %1424 = vrot.lane.b32.xlu2 %v2987_v39, %s1922_s29 }
 0x5fa   :  { %v1244_v61 = vpop.permute.xlu2 %1243 }
 0x5fb   :  { %v1252_v63 = vsel %vm3150_vm7, %v2969_v37, %v1244_v61  ;;  %vm3166_vm7 = vmmov %vm3164_vm9 }
 0x602   :  { %v1281_v3 = vpop.permute.xlu2 %1280 }
 0x603   :  { %v1283_v9 = vsel %vm3153_vm14, %v1281_v3, %v2969_v37  ;;  %vm3169_vm14 = vmmov %vm3160_vm4 }
 0x604   :  { %v1284_v10 = vsel %vm3156_vm10, %v1283_v9, %v1244_v61  ;;  %vm3172_vm10 = vcmask 785408  }
 0x60a   :  { %v1012_v29 = vpop.permute.xlu2 %1011 }
 0x60b   :  { %v1020_v32 = vsel %vm3169_vm14, %v2985_v35, %v1012_v29 }
 0x611   :  { %v1250_v0 = vpop.permute.xlu1 %1249  ;;  %v1247_v1 = vpop.permute.xlu0 %1246 }
 0x612   :  { %v1253_v4 = vsel %vm3151_vm8, %v1252_v63, %v1247_v1  ;;  %v1285_v11 = vsel %vm3157_vm12, %v1284_v10, %v1247_v1  ;;  %vm3167_vm8 = vmmov %vm3155_vm3  ;;  %v1538_v10 = vld [vmem:[#allocation4 + $0xf8] sm:$0xff] }
 0x613   :  { %v1254_v6 = vsel %vm3152_vm11, %v1253_v4, %v1250_v0  ;;  %v1286_v15 = vmul.f32 %v1285_v11, %v1165_v5  ;;  %vm3168_vm11 = vmmov %vm3160_vm4  ;;  %v1537_v11 = vld [vmem:[#allocation4 + $0xf0] sm:$0xff]  ;;  %1539 = vmatpush.msrb.mxu0 %v1538_v10 }
 0x614   :  { %v1255_v7 = vmul.f32 %v1254_v6, %v1165_v5  ;;  %vm3173_vm12 = vmmov %vm3172_vm10 }
 0x615   :  { %1540 = vmatpush.msrb.mxu0 %v1537_v11 }
 0x616   :  { %1754 = vmatmul.msk.f32.vlgmr.msra.gmra.mxu3 %vm3154_vm15, %v1255_v7  ;;  %vm3170_vm15 = vmmov %vm3166_vm7 }
 0x617   :  { %1784 = vmatpush.msk.msra.mxu3 %vm3155_vm3, %v2220_v16  ;;  %vm3171_vm3 = vmmov %vm3166_vm7 }
 0x619   :  { %v1343_v12 = vpop.permute.xlu1 %1342  ;;  %v1312_v13 = vpop.permute.xlu0 %1311 }
 0x61a   :  { %v1314_v14 = vsel %vm3158_vm5, %v1312_v13, %v1281_v3  ;;  %v1345_v18 = vsel %vm3159_vm1, %v1343_v12, %v1312_v13  ;;  %vm3174_vm5 = vmmov %vm3160_vm4 }
 0x61b   :  { %v1315_v19 = vsel %vm3160_vm4, %v1314_v14, %v2969_v37  ;;  %v1346_v20 = vsel %vm3161_vm6, %v1345_v18, %v1281_v3  ;;  %vm3175_vm1 = vmmov %vm3160_vm4  ;;  %v1536_v14 = vld [vmem:[#allocation4 + $0xe8] sm:$0xff] }
 0x61c   :  { %v1316_v21 = vsel %vm3162_vm0, %v1315_v19, %v1244_v61  ;;  %v1347_v23 = vsel %vm3163_vm2, %v1346_v20, %v2969_v37  ;;  %vm3176_vm4 = vmmov %vm3171_vm3  ;;  %v1535_v19 = vld [vmem:[#allocation4 + $0xe0] sm:$0xff]  ;;  %1541 = vmatpush.msrb.mxu0 %v1536_v14  ;;  %v1534_v20 = vld [vmem:[#allocation4 + $0xd8] sm:$0xff] }
 0x61d   :  { %v1317_v24 = vmul.f32 %v1316_v21, %v1165_v5  ;;  %v1348_v26 = vmul.f32 %v1347_v23, %v1165_v5  ;;  %vm3177_vm6 = vmmov %vm3171_vm3  ;;  %v1532_v21 = vld [vmem:[#allocation4 + $0xc8] sm:$0xff] }
 0x61e   :  { %1763 = vmatmul.msk.f32.vlgmr.msrb.gmra.mxu3 %vm3164_vm9, %v1286_v15  ;;  %vm3178_vm0 = vmmov %vm3172_vm10  ;;  %1542 = vmatpush.msrb.mxu0 %v1535_v19  ;;  %v1533_v15 = vld [vmem:[#allocation4 + $0xd0] sm:$0xff]  ;;  %vm3180_vm9 = vcmask 31744  }
 0x61f   :  { %1772 = vmatmul.msk.f32.vlgmr.msra.gmra.mxu0 %vm3165_vm13, %v1317_v24  ;;  %1781 = vmatmul.msk.f32.vlgmr.msra.gmra.mxu1 %vm3166_vm7, %v1348_v26  ;;  %vm3179_vm2 = vmmov %vm3178_vm0 }
 0x620   :  { %1788 = vmatpush.msk.msrb.mxu3 %vm3167_vm8, %v2220_v16  ;;  %1543 = vmatpush.msrb.mxu0 %v1534_v20  ;;  %vm3181_vm13 = vmmov %vm3180_vm9 }
 0x621   :  { %v1018_v27 = vpop.permute.xlu0 %1017  ;;  %vm3182_vm7 = vmmov %vm3167_vm8 }
 0x622   :  { %v1050_v30 = vsel %vm3168_vm11, %v1018_v27, %v2985_v35  ;;  %1544 = vmatpush.msrb.mxu0 %v1533_v15  ;;  %vm3183_vm8 = vmmov %vm3180_vm9 }
 0x623   :  { %v1051_v33 = vsel %vm3171_vm3, %v1050_v30, %v1012_v29  ;;  %vm3184_vm11 = vmmov %vm3183_vm8 }
 0x624   :  { %1545 = vmatpush.msrb.mxu0 %v1532_v21  ;;  %vm3185_vm14 = vmmov %vm3183_vm8 }
 0x629   :  { %v1015_v31 = vpop.permute.xlu0 %1014 }
 0x62a   :  { %v1021_v28 = vsel %vm3170_vm15, %v1020_v32, %v1015_v31  ;;  %v1052_v42 = vsel %vm3173_vm12, %v1051_v33, %v1015_v31  ;;  %v1080_v43 = vsel %vm3174_vm5, %v1015_v31, %v1018_v27  ;;  %v1110_v48 = vsel %vm3175_vm1, %v1012_v29, %v1015_v31  ;;  %vm3186_vm15 = vmmov %vm3175_vm1 }
 0x62b   :  { %v1022_v41 = vsel %vm3172_vm10, %v1021_v28, %v1018_v27  ;;  %v1053_v50 = vmul.f32 %v1052_v42, %v2967_v36  ;;  %v1081_v51 = vsel %vm3176_vm4, %v1080_v43, %v2985_v35  ;;  %v1111_v52 = vsel %vm3177_vm6, %v1110_v48, %v1018_v27  ;;  %v1531_v27 = vld [vmem:[#allocation4 + $0xc0] sm:$0xff]  ;;  %v1529_v42 = vld [vmem:[#allocation4 + $0xb0] sm:$0xff]  ;;  %v1528_v43 = vld [vmem:[#allocation4 + $0xa8] sm:$0xff] }
 0x62c   :  { %v1023_v49 = vmul.f32 %v1022_v41, %v2965_v34  ;;  %v1082_v37 = vsel %vm3178_vm0, %v1081_v51, %v1012_v29  ;;  %v1112_v44 = vsel %vm3179_vm2, %v1111_v52, %v2985_v35  ;;  %1546 = vmatpush.msrb.mxu0 %v1531_v27  ;;  %v1530_v41 = vld [vmem:[#allocation4 + $0xb8] sm:$0xff]  ;;  %v1527_v48 = vld [vmem:[#allocation4 + $0xa0] sm:$0xff]  ;;  %v1419_v52 = vpop.permute.xlu1 %1418  ;;  %vm3187_vm10 = vmmov %vm3175_vm1 }
 0x62d   :  { %v1083_v46 = vmul.f32 %v1082_v37, %v2977_v38  ;;  %v1113_v55 = vmul.f32 %v1112_v44, %v1107_v53  ;;  %v1523_v51 = vld [vmem:[#allocation4 + $0x80] sm:$0xff]  ;;  %v1425_v44 = vpop.permute.xlu2 %1424  ;;  %vm3188_vm12 = vmmov %vm3175_vm1 }
 0x62e   :  { %v1054_v45 = vadd.f32 %v1053_v50, %v1023_v49  ;;  %1547 = vmatpush.msrb.mxu0 %v1530_v41  ;;  %v1525_v49 = vld [vmem:[#allocation4 + $0x90] sm:$0xff]  ;;  %v1524_v50 = vld [vmem:[#allocation4 + $0x88] sm:$0xff]  ;;  %vm3189_vm5 = vmmov %vm3171_vm3 }
 0x62f   :  { %vm3190_vm4 = vmmov %vm3178_vm0 }
 0x630   :  { %v1084_v54 = vadd.f32 %v1083_v46, %v1054_v45  ;;  %1548 = vmatpush.msrb.mxu0 %v1529_v42  ;;  %vm3191_vm6 = vmmov %vm3178_vm0 }
 0x631   :  { %vm3192_vm0 = vmmov %vm3171_vm3 }
 0x632   :  { %v1114_v56 = vadd.f32 %v1113_v55, %v1084_v54  ;;  %1549 = vmatpush.msrb.mxu0 %v1528_v43  ;;  %v1457_v54 = vsel %vm3187_vm10, %v1425_v44, %v2987_v39  ;;  %vm3193_vm2 = vmmov %vm3192_vm0 }
 0x634   :  { %1575 = vmatmul.f32.vlgmr.msrb.gmra.mxu1 %v1114_v56  ;;  %1550 = vmatpush.msrb.mxu0 %v1527_v48  ;;  %v1422_v37 = vpop.permute.xlu1 %1421  ;;  %v1458_v56 = vsel %vm3189_vm5, %v1457_v54, %v1419_v52 }
 0x635   :  { %v1487_v55 = vsel %vm3188_vm12, %v1422_v37, %v1425_v44 }
 0x699   :  { %v1276_v34 = vpop.f32.mrf.mxu3 }
 0x69a   :  { %v1279_v58 = vmul.f32 0.25, %v1276_v34  ;;  %v1517_v34 = vsel %vm3175_vm1, %v1419_v52, %v1422_v37 }
 0x69c   :  { %v1338_v36 = vpop.f32.mrf.mxu0  ;;  %v1369_v60 = vpop.f32.mrf.mxu1 }
 0x69d   :  { %v1341_v61 = vmul.f32 0.25, %v1338_v36  ;;  %v1372_v62 = vmul.f32 0.25, %v1369_v60  ;;  %v1488_v60 = vsel %vm3192_vm0, %v1487_v55, %v2987_v39 }
 0x6a1   :  { %v1307_v57 = vpop.f32.mrf.mxu3 }
 0x6a2   :  { %v1310_v59 = vmul.f32 0.25, %v1307_v57  ;;  %v1459_v57 = vsel %vm3191_vm6, %v1458_v56, %v1422_v37 }
 0x6a4   :  { %v1373_v8 = vmax.f32 %v1279_v58, %v1310_v59 }
 0x6a6   :  { %v1374_v25 = vmax.f32 %v1373_v8, %v1341_v61 }
 0x6a8   :  { %v1375_v22 = vmax.f32 %v1374_v25, %v1372_v62 }
 0x6aa   :  { %v1376_v35 = vsub.f32 %v1279_v58, %v1375_v22  ;;  %v1379_v63 = vsub.f32 %v1310_v59, %v1375_v22  ;;  %v1382_v0 = vsub.f32 %v1341_v61, %v1375_v22  ;;  %v1385_v38 = vsub.f32 %v1372_v62, %v1375_v22 }
 0x6ab   :  { %v1518_v61 = vsel %vm3193_vm2, %v1517_v34, %v1425_v44 }
 0x6ac   :  { %v1377_v1 = vmul.f32 1.442695, %v1376_v35  ;;  %v1380_v2 = vmul.f32 1.442695, %v1379_v63  ;;  %v1383_v3 = vmul.f32 1.442695, %v1382_v0 }
 0x6ad   :  { %v1386_v4 = vmul.f32 1.442695, %v1385_v38 }
 0x6ae   :  { %1844 = vpow2.f32 %v1377_v1 }
 0x6af   :  { %1846 = vpow2.f32 %v1380_v2 }
 0x6b0   :  { %1848 = vpow2.f32 %v1383_v3 }
 0x6b1   :  { %1850 = vpow2.f32 %v1386_v4  ;;  %v1576_v3 = vpop.f32.mrf.mxu1 }
 0x6b4   :  { %v1845_v5 = vpop.eup %1844 }
 0x6b5   :  { %v1847_v6 = vpop.eup %1846 }
 0x6b6   :  { %v1388_v7 = vadd.f32 %v1847_v6, %v1845_v5  ;;  %v1849_v9 = vpop.eup %1848 }
 0x6b7   :  { %v1851_v13 = vpop.eup %1850 }
 0x6b8   :  { %v1389_v12 = vadd.f32 %v1849_v9, %v1388_v7 }
 0x6ba   :  { %v1390_v18 = vadd.f32 %v1851_v13, %v1389_v12 }
 0x6bc   :  { %1852 = vrcp.f32 %v1390_v18 }
 0x6c2   :  { %v1853_v23 = vpop.eup %1852 }
 0x6c3   :  { %v1432_v24 = vmul.f32 %v1853_v23, %v1847_v6  ;;  %v1392_v26 = vmul.f32 %v1853_v23, %v1845_v5  ;;  %v1462_v31 = vmul.f32 %v1853_v23, %v1849_v9  ;;  %v1492_v32 = vmul.f32 %v1853_v23, %v1851_v13 }
 0x6c5   :  { %v1393_v29 = vmul.f32 %v2328_v17, %v1392_v26  ;;  %v1433_v30 = vmul.f32 %v2328_v17, %v1432_v24  ;;  %v1463_v28 = vmul.f32 %v2328_v17, %v1462_v31  ;;  %v1493_v33 = vmul.f32 %v2328_v17, %v1492_v32 }
 0x6c7   :  { %1783 = vmatmul.msk.f32.vlgmr.msrb.gmra.mxu2 %vm3180_vm9, %v1393_v29  ;;  %1785 = vmatmul.msk.f32.vlgmr.msra.gmra.mxu3 %vm3181_vm13, %v1433_v30  ;;  %vm3194_vm9 = vmmov %vm3190_vm4 }
 0x6c8   :  { %1790 = vmatpush.msk.msrb.mxu2 %vm3182_vm7, %v2220_v16  ;;  %v1526_v16 = vld [vmem:[#allocation4 + $0x98] sm:$0xff]  ;;  %v1489_v62 = vsel %vm3194_vm9, %v1488_v60, %v1419_v52  ;;  %vm3195_vm13 = vmmov %vm3190_vm4 }
 0x6c9   :  { %1551 = vmatpush.msrb.mxu0 %v1526_v16  ;;  %v1519_v63 = vsel %vm3195_vm13, %v1518_v61, %v2987_v39 }
 0x6cb   :  { %1552 = vmatpush.msrb.mxu0 %v1525_v49 }
 0x6cd   :  { %1553 = vmatpush.msrb.mxu0 %v1524_v50 }
 0x6cf   :  { %1787 = vmatmul.msk.f32.vlgmr.msra.gmra.mxu2 %vm3183_vm8, %v1463_v28  ;;  %1789 = vmatmul.msk.f32.vlgmr.msrb.gmra.mxu3 %vm3184_vm11, %v1493_v33 }
 0x6d0   :  { %1554 = vmatpush.msrb.mxu0 %v1523_v51 }
 0x6d7   :  { %1791 = vmatmul.msk.f32.vlgmr.msrb.gmra.mxu2 %vm3185_vm14, %v2328_v17  ;;  %v1427_v17 = vsel %vm3186_vm15, %v2987_v39, %v1419_v52 }
 0x6d8   :  { %v1428_v53 = vsel %vm3171_vm3, %v1427_v17, %v1422_v37 }
 0x6d9   :  { %v1429_v36 = vsel %vm3190_vm4, %v1428_v53, %v1425_v44 }
 0x74a   :  { %v1414_v45 = vpop.f32.mrf.mxu2  ;;  %v1454_v46 = vpop.f32.mrf.mxu3 }
 0x74b   :  { %v1430_v58 = vmul.f32 %v1429_v36, %v1414_v45  ;;  %v1460_v59 = vmul.f32 %v1459_v57, %v1454_v46 }
 0x74d   :  { %v1461_v22 = vadd.f32 %v1460_v59, %v1430_v58 }
 0x752   :  { %v1484_v8 = vpop.f32.mrf.mxu2  ;;  %v1514_v25 = vpop.f32.mrf.mxu3 }
 0x753   :  { %v1490_v35 = vmul.f32 %v1489_v62, %v1484_v8  ;;  %v1520_v38 = vmul.f32 %v1519_v63, %v1514_v25 }
 0x755   :  { %v1491_v0 = vadd.f32 %v1490_v35, %v1461_v22 }
 0x757   :  { %v1521_v1 = vadd.f32 %v1520_v38, %v1491_v0 }
 0x759   :  { %1555 = vmatmul.f32.vlgmr.msrb.gmra.mxu0 %v1521_v1 }
 0x75a   :  { %v1600_v2 = vpop.f32.mrf.mxu2 }
 0x75b   :  { %v1604_v5 = vsub.f32 1.0, %v1600_v2 }
 0x75d   :  { %v1605_v9 = vmul.f32 %v2674_v40, %v1604_v5 }
 0x7d6   :  { %v1556_v4 = vpop.f32.mrf.mxu0 }
 0x7d7   :  { %v1577_v6 = vadd.f32 %v1576_v3, %v1556_v4 }
 0x7d9   :  { %v1579_v7 = vadd.f32 %v1577_v6, %v2677_v47 }
 0x7db   :  { %v1603_v10 = vmul.f32 %v1600_v2, %v1579_v7 }
 0x7dd   :  { %v1606_v11 = vadd.f32 %v1605_v9, %v1603_v10 }
 0x7df   :  { %1607 = vst [vmem:[%s3090_s13] sm:$0x3] %v1606_v11 }
 0x7e0   :  { %1612 = vsyncpa [#allocation3], 1 }
 0x7e1   :  { %1613 = vsyncpa [#allocation5], 1 }

</bundles_post_ra>
